<compile_context>
chip_gen: v7x
topology: tpu7x:2x2x1
jax: 0.10.0
libtpu: 0.0.40
codegen_flags: <defaults>
</compile_context>

<pallas_src>
import functools

import jax
import jax.numpy as jnp
from jax import lax
from jax.experimental import pallas as pl
from jax.experimental.pallas import tpu as pltpu

_MASK_BIAS = -1e6  # d2l masked_softmax fill value (additive form)


def mha_kernel(vl_ref,                              # (bt, 1, 1) int32 valid_lens tile (VMEM)
               q_ref, k_ref, v_ref,                 # (bt, Lq, Dq), (bt, Lk, Dk), (bt, Lk, Dv)
               wq_ref, wk_ref, wv_ref, wo_ref,      # (Dq, H), (Dk, H), (Dv, H), (H, H)
               o_ref,                               # (bt, Lq, H)
               concat_ref,                          # VMEM scratch (bt*Lq, H)
               *, num_heads):
    bt, Lq, Dq = q_ref.shape
    _, Lk, Dk = k_ref.shape
    _, _, Dv = v_ref.shape
    H = wq_ref.shape[1]
    dh = H // num_heads
    cdt = q_ref.dtype                               # MXU operand dtype (f32 or bf16)

    # Flatten (bt, L, D) -> (bt*L, D): projection matmuls get a tall M axis.
    q_in = q_ref[...].reshape(bt * Lq, Dq)
    k_in = k_ref[...].reshape(bt * Lk, Dk)
    v_in = v_ref[...].reshape(bt * Lk, Dv)

    # Input projections (MXU, f32 accumulation).  1/sqrt(dh) folded into Q
    # once: a single full-width f32 multiply instead of num_heads narrow ones.
    scale = 1.0 / float(dh) ** 0.5
    q = jnp.dot(q_in, wq_ref[...], preferred_element_type=jnp.float32) * scale
    k = jnp.dot(k_in, wk_ref[...], preferred_element_type=jnp.float32)
    v = jnp.dot(v_in, wv_ref[...], preferred_element_type=jnp.float32)

    # One full-width cast back to the MXU operand dtype (not per-head slices).
    q3 = q.reshape(bt, Lq, H).astype(cdt)
    k3 = k.reshape(bt, Lk, H).astype(cdt)
    v3 = v.reshape(bt, Lk, H).astype(cdt)

    # Vectorized length mask: one compare + select from the VMEM lens tile.
    key_ids = lax.broadcasted_iota(jnp.int32, (bt, Lq, Lk), 2)
    neg_bias = jnp.where(key_ids < vl_ref[...],        # (bt,1,1) broadcasts
                         jnp.float32(0.0), jnp.float32(_MASK_BIAS))

    # Per-head attention.  Head outputs land at static lane offsets in the
    # concat scratch; Wo is applied once with a full K=H contraction after the
    # loop (instead of num_heads K=dh matmuls).
    for h in range(num_heads):                       # static, small head loop
        sl = slice(h * dh, (h + 1) * dh)
        scores = jnp.einsum('bqd,bkd->bqk', q3[:, :, sl], k3[:, :, sl],
                            preferred_element_type=jnp.float32) + neg_bias
        m = jnp.max(scores, axis=-1, keepdims=True)
        p = jnp.exp(scores - m)
        denom = jnp.sum(p, axis=-1, keepdims=True)
        attn = p * pl.reciprocal(denom, approx=True)                 # EUP slot
        # TODO(synk): dropout(p=0.5) on attn omitted (eval-mode identity).
        head = jnp.einsum('bqk,bkd->bqd', attn.astype(cdt), v3[:, :, sl],
                          preferred_element_type=jnp.float32)        # (bt,Lq,dh)
        concat_ref[:, sl] = head.reshape(bt * Lq, dh).astype(concat_ref.dtype)

    out = jnp.dot(concat_ref[...], wo_ref[...],
                  preferred_element_type=jnp.float32)                # (bt*Lq, H)
    o_ref[...] = out.reshape(bt, Lq, H).astype(o_ref.dtype)


def _pick_batch_tile(B, Lq, per_batch_bytes, budget_bytes, target_rows=512):
    """Batch tile selection:
      * divisor of B (never silently drops a tail),
      * fits the per-grid-step VMEM budget,
      * prefers >= 2 grid steps (v7x megacore + keeps the pipeline alive),
      * grows until block_b*Lq reaches `target_rows` (MXU M fill: 128 on v5e,
        256 on v6e/v7x, with headroom) and then stops growing.
    """
    divisors = [d for d in range(1, B + 1) if B % d == 0]
    fitting = [d for d in divisors if d * per_batch_bytes <= budget_bytes] or divisors[:1]
    multi_step = [d for d in fitting if B // d >= 2]
    pool = multi_step if multi_step else fitting
    reaching = [d for d in pool if d * Lq >= target_rows]
    return min(reaching) if reaching else max(pool)


def multi_head_attention(queries, keys, values, valid_lens, wq, wk, wv, wo, *,
                         num_heads, block_b=None, compute_dtype=None,
                         vmem_limit_bytes=32 * 1024 * 1024):
    B, Lq, Dq = queries.shape
    _, Lk, Dk = keys.shape
    _, _, Dv = values.shape
    H = wq.shape[1]
    if H % num_heads != 0:
        raise ValueError("num_hiddens must be divisible by num_heads")

    # bf16 MXU operands recommended on v5e/v6e (f32 accumulation is kept inside
    # the kernel).  TODO(synk): fp8 weight path for v7x not implemented.
    if compute_dtype is not None:
        queries, keys, values = (x.astype(compute_dtype) for x in (queries, keys, values))
        wq, wk, wv, wo = (w.astype(compute_dtype) for w in (wq, wk, wv, wo))
    act_dtype = queries.dtype
    act_bytes = jnp.dtype(act_dtype).itemsize

    if valid_lens is None:
        valid_lens = jnp.full((B,), Lk, dtype=jnp.int32)
    # (B,1,1) so the per-tile block (block_b,1,1) keeps full-dim trailing dims.
    vl3d = valid_lens.astype(jnp.int32).reshape(B, 1, 1)

    # VMEM budgeting: double-buffered activation tiles + concat scratch per
    # batch element; resident weight blocks + headroom subtracted up front.
    per_batch = (2 * (Lq * Dq + Lk * Dk + Lk * Dv + Lq * H) + Lq * H) * act_bytes + 2 * 4
    weight_bytes = 2 * (Dq + Dk + Dv + H) * H * act_bytes
    budget = max(vmem_limit_bytes - weight_bytes - (4 << 20), per_batch)

    if block_b is None:
        block_b = _pick_batch_tile(B, Lq, per_batch, budget)
    if block_b < 1 or block_b > B or B % block_b != 0:
        raise ValueError(f"block_b={block_b} must be a divisor of batch {B} "
                         "(grid would silently drop trailing batch elements)")
    grid = (B // block_b,)

    grid_spec = pltpu.PrefetchScalarGridSpec(
        num_scalar_prefetch=0,
        grid=grid,
        in_specs=[
            pl.BlockSpec((block_b, 1, 1), lambda i: (i, 0, 0)),      # valid_lens
            pl.BlockSpec((block_b, Lq, Dq), lambda i: (i, 0, 0)),
            pl.BlockSpec((block_b, Lk, Dk), lambda i: (i, 0, 0)),
            pl.BlockSpec((block_b, Lk, Dv), lambda i: (i, 0, 0)),
            # Weights: constant block index across the grid -> resident in VMEM.
            pl.BlockSpec((Dq, H), lambda i: (0, 0)),
            pl.BlockSpec((Dk, H), lambda i: (0, 0)),
            pl.BlockSpec((Dv, H), lambda i: (0, 0)),
            pl.BlockSpec((H, H), lambda i: (0, 0)),
        ],
        out_specs=pl.BlockSpec((block_b, Lq, H), lambda i: (i, 0, 0)),
        scratch_shapes=[pltpu.VMEM((block_b * Lq, H), act_dtype)],   # head concat
    )

    out = pl.pallas_call(
        functools.partial(mha_kernel, num_heads=num_heads),
        out_shape=jax.ShapeDtypeStruct((B, Lq, H), act_dtype),
        grid_spec=grid_spec,
        compiler_params=pltpu.CompilerParams(
            dimension_semantics=("parallel",),        # batch tiles are independent
            vmem_limit_bytes=vmem_limit_bytes),
    )(vl3d, queries, keys, values, wq, wk, wv, wo)
    return out


def reference_mha(queries, keys, values, valid_lens, wq, wk, wv, wo, *, num_heads):
    """Pure-JAX reference of the PyTorch module forward (eval mode)."""
    B, Lq, _ = queries.shape
    Lk = keys.shape[1]
    H = wq.shape[1]
    dh = H // num_heads
    q = queries @ wq
    k = keys @ wk
    v = values @ wv

    def split(x):
        return x.reshape(B, -1, num_heads, dh).transpose(0, 2, 1, 3)

    qh, kh, vh = split(q), split(k), split(v)
    scores = jnp.einsum('bhqd,bhkd->bhqk', qh, kh) / jnp.sqrt(jnp.float32(dh))
    mask = jnp.arange(Lk)[None, None, None, :] < valid_lens[:, None, None, None]
    scores = jnp.where(mask, scores, -1e6)
    attn = jax.nn.softmax(scores, axis=-1)
    out = jnp.einsum('bhqk,bhkd->bhqd', attn, vh)
    out = out.transpose(0, 2, 1, 3).reshape(B, Lq, H)
    return out @ wo


if __name__ == "__main__":
    B, Lq, Lk = 16, 8, 8
    num_hiddens, num_heads = 32, 4
    query_size = key_size = value_size = num_hiddens

    key = jax.random.PRNGKey(0)
    kq, kk, kv, kwq, kwk, kwv, kwo = jax.random.split(key, 7)

    queries = jax.random.normal(kq, (B, Lq, query_size), dtype=jnp.float32)
    keys = jax.random.normal(kk, (B, Lk, key_size), dtype=jnp.float32)
    values = jax.random.normal(kv, (B, Lk, value_size), dtype=jnp.float32)
    valid_lens = (jnp.arange(B, dtype=jnp.int32) % Lk) + 1

    # Deterministic parameter init (nn.Linear(..., bias=False) weight shapes,
    # stored as (in, out) so x @ W matches x @ weight.T in PyTorch).
    wscale = 0.1
    wq = wscale * jax.random.normal(kwq, (query_size, num_hiddens), dtype=jnp.float32)
    wk = wscale * jax.random.normal(kwk, (key_size, num_hiddens), dtype=jnp.float32)
    wv = wscale * jax.random.normal(kwv, (value_size, num_hiddens), dtype=jnp.float32)
    wo = wscale * jax.random.normal(kwo, (num_hiddens, num_hiddens), dtype=jnp.float32)

    ref = reference_mha(queries, keys, values, valid_lens, wq, wk, wv, wo,
                        num_heads=num_heads)

    # f32 path: default picker chooses block_b=8 -> grid=(2,) (>=2 steps).
    out = multi_head_attention(queries, keys, values, valid_lens,
                               wq, wk, wv, wo, num_heads=num_heads)
    out = jax.block_until_ready(out)
    assert out.shape == (B, Lq, num_hiddens)
    # Tolerance covers the approx-reciprocal softmax normalisation.
    assert jnp.allclose(out, ref, atol=2e-3, rtol=2e-3), "f32 mismatch vs reference"

    # bf16 MXU-operand path (recommended on v5e/v6e); f32 accumulation inside.
    out_bf16 = multi_head_attention(queries, keys, values, valid_lens,
                                    wq, wk, wv, wo, num_heads=num_heads,
                                    compute_dtype=jnp.bfloat16)
    out_bf16 = jax.block_until_ready(out_bf16)
    assert jnp.allclose(out_bf16.astype(jnp.float32), ref,
                        atol=3e-2, rtol=3e-2), "bf16 mismatch vs reference"

    print("KERNEL_OK")
</pallas_src>

<mosaic_0001>
module attributes {stable_mosaic.version = 11 : i64} {
  func.func @mha_kernel(%arg0: i32, %arg1: memref<8x1x1xi32, #tpu.memory_space<vmem>>, %arg2: memref<8x8x32xf32, #tpu.memory_space<vmem>>, %arg3: memref<8x8x32xf32, #tpu.memory_space<vmem>>, %arg4: memref<8x8x32xf32, #tpu.memory_space<vmem>>, %arg5: memref<32x32xf32, #tpu.memory_space<vmem>>, %arg6: memref<32x32xf32, #tpu.memory_space<vmem>>, %arg7: memref<32x32xf32, #tpu.memory_space<vmem>>, %arg8: memref<32x32xf32, #tpu.memory_space<vmem>>, %arg9: memref<8x8x32xf32, #tpu.memory_space<vmem>>, %arg10: memref<64x32xf32, #tpu.memory_space<vmem>>) attributes {dimension_semantics = [#tpu.dimension_semantics<parallel>], iteration_bounds = array<i64: 2>, scalar_prefetch = 0 : i64, scratch_operands = 1 : i64, tpu.core_type = #tpu.core_type<tc>, window_params = [{transform_indices = @transform_0, window_bounds = array<i64: 8, 1, 1>}, {transform_indices = @transform_1, window_bounds = array<i64: 8, 8, 32>}, {transform_indices = @transform_2, window_bounds = array<i64: 8, 8, 32>}, {transform_indices = @transform_3, window_bounds = array<i64: 8, 8, 32>}, {pipeline_mode = #tpu.pipeline_mode<synchronous>, transform_indices = @transform_4, window_bounds = array<i64: 32, 32>}, {pipeline_mode = #tpu.pipeline_mode<synchronous>, transform_indices = @transform_5, window_bounds = array<i64: 32, 32>}, {pipeline_mode = #tpu.pipeline_mode<synchronous>, transform_indices = @transform_6, window_bounds = array<i64: 32, 32>}, {pipeline_mode = #tpu.pipeline_mode<synchronous>, transform_indices = @transform_7, window_bounds = array<i64: 32, 32>}, {transform_indices = @transform_8, window_bounds = array<i64: 8, 8, 32>}]} {
    %c0 = arith.constant 0 : index
    %c0_0 = arith.constant 0 : index
    %c0_1 = arith.constant 0 : index
    %0 = vector.load %arg2[%c0, %c0_0, %c0_1] : memref<8x8x32xf32, #tpu.memory_space<vmem>>, vector<8x8x32xf32>
    %1 = vector.shape_cast %0 : vector<8x8x32xf32> to vector<64x32xf32>
    %c0_2 = arith.constant 0 : index
    %c0_3 = arith.constant 0 : index
    %c0_4 = arith.constant 0 : index
    %2 = vector.load %arg3[%c0_2, %c0_3, %c0_4] : memref<8x8x32xf32, #tpu.memory_space<vmem>>, vector<8x8x32xf32>
    %3 = vector.shape_cast %2 : vector<8x8x32xf32> to vector<64x32xf32>
    %c0_5 = arith.constant 0 : index
    %c0_6 = arith.constant 0 : index
    %c0_7 = arith.constant 0 : index
    %4 = vector.load %arg4[%c0_5, %c0_6, %c0_7] : memref<8x8x32xf32, #tpu.memory_space<vmem>>, vector<8x8x32xf32>
    %5 = vector.shape_cast %4 : vector<8x8x32xf32> to vector<64x32xf32>
    %c0_8 = arith.constant 0 : index
    %c0_9 = arith.constant 0 : index
    %6 = vector.load %arg5[%c0_8, %c0_9] : memref<32x32xf32, #tpu.memory_space<vmem>>, vector<32x32xf32>
    %cst = arith.constant dense<0.000000e+00> : vector<64x32xf32>
    %7 = tpu.matmul %1, %6, %cst {dimension_numbers = #tpu.dot_dimension_numbers<[1], [0], [0], [1], [0, 0, 1, 1], [], []>} : vector<64x32xf32>, vector<32x32xf32>, vector<64x32xf32> -> vector<64x32xf32>
    %cst_10 = arith.constant 0.353553385 : f32
    %8 = vector.broadcast %cst_10 : f32 to vector<64x32xf32>
    %9 = arith.mulf %7, %8 : vector<64x32xf32>
    %c0_11 = arith.constant 0 : index
    %c0_12 = arith.constant 0 : index
    %10 = vector.load %arg6[%c0_11, %c0_12] : memref<32x32xf32, #tpu.memory_space<vmem>>, vector<32x32xf32>
    %cst_13 = arith.constant dense<0.000000e+00> : vector<64x32xf32>
    %11 = tpu.matmul %3, %10, %cst_13 {dimension_numbers = #tpu.dot_dimension_numbers<[1], [0], [0], [1], [0, 0, 1, 1], [], []>} : vector<64x32xf32>, vector<32x32xf32>, vector<64x32xf32> -> vector<64x32xf32>
    %c0_14 = arith.constant 0 : index
    %c0_15 = arith.constant 0 : index
    %12 = vector.load %arg7[%c0_14, %c0_15] : memref<32x32xf32, #tpu.memory_space<vmem>>, vector<32x32xf32>
    %cst_16 = arith.constant dense<0.000000e+00> : vector<64x32xf32>
    %13 = tpu.matmul %5, %12, %cst_16 {dimension_numbers = #tpu.dot_dimension_numbers<[1], [0], [0], [1], [0, 0, 1, 1], [], []>} : vector<64x32xf32>, vector<32x32xf32>, vector<64x32xf32> -> vector<64x32xf32>
    %14 = vector.shape_cast %9 : vector<64x32xf32> to vector<8x8x32xf32>
    %15 = vector.shape_cast %11 : vector<64x32xf32> to vector<8x8x32xf32>
    %16 = vector.shape_cast %13 : vector<64x32xf32> to vector<8x8x32xf32>
    %17 = tpu.iota {dimensions = array<i32: 2>} : vector<8x8x8xi32>
    %c0_17 = arith.constant 0 : index
    %c0_18 = arith.constant 0 : index
    %c0_19 = arith.constant 0 : index
    %18 = vector.load %arg1[%c0_17, %c0_18, %c0_19] : memref<8x1x1xi32, #tpu.memory_space<vmem>>, vector<8x1x1xi32>
    %19 = vector.broadcast %18 : vector<8x1x1xi32> to vector<8x8x8xi32>
    %20 = arith.cmpi slt, %17, %19 : vector<8x8x8xi32>
    %cst_20 = arith.constant 0.000000e+00 : f32
    %cst_21 = arith.constant -1.000000e+06 : f32
    %21 = vector.broadcast %cst_20 : f32 to vector<8x8x8xf32>
    %22 = vector.broadcast %cst_21 : f32 to vector<8x8x8xf32>
    %23 = arith.select %20, %21, %22 : vector<8x8x8xi1>, vector<8x8x8xf32>
    %24 = vector.extract_strided_slice %14 {offsets = [0, 0, 0], sizes = [8, 8, 8], strides = [1, 1, 1]} : vector<8x8x32xf32> to vector<8x8x8xf32>
    %25 = vector.extract_strided_slice %15 {offsets = [0, 0, 0], sizes = [8, 8, 8], strides = [1, 1, 1]} : vector<8x8x32xf32> to vector<8x8x8xf32>
    "tpu.trace_start"() <{level = 10 : i32, message = "bqd,bkd->bqk"}> : () -> ()
    %cst_22 = arith.constant dense<0.000000e+00> : vector<8x8x8xf32>
    %26 = tpu.matmul %24, %25, %cst_22 {dimension_numbers = #tpu.dot_dimension_numbers<[2], [2], [1], [1], [0, 0, 0, 1, 1, 1], [0], [0]>} : vector<8x8x8xf32>, vector<8x8x8xf32>, vector<8x8x8xf32> -> vector<8x8x8xf32>
    "tpu.trace_stop"() : () -> ()
    %27 = arith.addf %26, %23 : vector<8x8x8xf32>
    %cst_23 = arith.constant dense<0xFF800000> : vector<8x8xf32>
    %28 = vector.multi_reduction <maximumf>, %27, %cst_23 [2] : vector<8x8x8xf32> to vector<8x8xf32>
    %29 = vector.shape_cast %28 : vector<8x8xf32> to vector<8x8x1xf32>
    %30 = vector.broadcast %29 : vector<8x8x1xf32> to vector<8x8x8xf32>
    %31 = arith.subf %27, %30 : vector<8x8x8xf32>
    %32 = math.exp %31 : vector<8x8x8xf32>
    %cst_24 = arith.constant dense<0.000000e+00> : vector<8x8xf32>
    %33 = vector.multi_reduction <add>, %32, %cst_24 [2] : vector<8x8x8xf32> to vector<8x8xf32>
    %34 = vector.shape_cast %33 : vector<8x8xf32> to vector<8x8x1xf32>
    %35 = tpu.reciprocal %34 {approx = true} : vector<8x8x1xf32> -> vector<8x8x1xf32>
    %36 = vector.broadcast %35 : vector<8x8x1xf32> to vector<8x8x8xf32>
    %37 = arith.mulf %32, %36 : vector<8x8x8xf32>
    %38 = vector.extract_strided_slice %16 {offsets = [0, 0, 0], sizes = [8, 8, 8], strides = [1, 1, 1]} : vector<8x8x32xf32> to vector<8x8x8xf32>
    "tpu.trace_start"() <{level = 10 : i32, message = "bqk,bkd->bqd"}> : () -> ()
    %cst_25 = arith.constant dense<0.000000e+00> : vector<8x8x8xf32>
    %39 = tpu.matmul %37, %38, %cst_25 {dimension_numbers = #tpu.dot_dimension_numbers<[2], [1], [1], [2], [0, 0, 0, 1, 1, 2], [0], [0]>} : vector<8x8x8xf32>, vector<8x8x8xf32>, vector<8x8x8xf32> -> vector<8x8x8xf32>
    "tpu.trace_stop"() : () -> ()
    %40 = vector.shape_cast %39 : vector<8x8x8xf32> to vector<64x8xf32>
    %c0_26 = arith.constant 0 : index
    %c0_27 = arith.constant 0 : index
    %41 = vector.load %arg10[%c0_26, %c0_27] : memref<64x32xf32, #tpu.memory_space<vmem>>, vector<64x8xf32>
    tpu.vector_store %arg10[%c0_26, %c0_27], %40 {strides = array<i32>} : memref<64x32xf32, #tpu.memory_space<vmem>>, vector<64x8xf32>,
    %42 = vector.extract_strided_slice %14 {offsets = [0, 0, 8], sizes = [8, 8, 8], strides = [1, 1, 1]} : vector<8x8x32xf32> to vector<8x8x8xf32>
    %43 = vector.extract_strided_slice %15 {offsets = [0, 0, 8], sizes = [8, 8, 8], strides = [1, 1, 1]} : vector<8x8x32xf32> to vector<8x8x8xf32>
    "tpu.trace_start"() <{level = 10 : i32, message = "bqd,bkd->bqk"}> : () -> ()
    %cst_28 = arith.constant dense<0.000000e+00> : vector<8x8x8xf32>
    %44 = tpu.matmul %42, %43, %cst_28 {dimension_numbers = #tpu.dot_dimension_numbers<[2], [2], [1], [1], [0, 0, 0, 1, 1, 1], [0], [0]>} : vector<8x8x8xf32>, vector<8x8x8xf32>, vector<8x8x8xf32> -> vector<8x8x8xf32>
    "tpu.trace_stop"() : () -> ()
    %45 = arith.addf %44, %23 : vector<8x8x8xf32>
    %cst_29 = arith.constant dense<0xFF800000> : vector<8x8xf32>
    %46 = vector.multi_reduction <maximumf>, %45, %cst_29 [2] : vector<8x8x8xf32> to vector<8x8xf32>
    %47 = vector.shape_cast %46 : vector<8x8xf32> to vector<8x8x1xf32>
    %48 = vector.broadcast %47 : vector<8x8x1xf32> to vector<8x8x8xf32>
    %49 = arith.subf %45, %48 : vector<8x8x8xf32>
    %50 = math.exp %49 : vector<8x8x8xf32>
    %cst_30 = arith.constant dense<0.000000e+00> : vector<8x8xf32>
    %51 = vector.multi_reduction <add>, %50, %cst_30 [2] : vector<8x8x8xf32> to vector<8x8xf32>
    %52 = vector.shape_cast %51 : vector<8x8xf32> to vector<8x8x1xf32>
    %53 = tpu.reciprocal %52 {approx = true} : vector<8x8x1xf32> -> vector<8x8x1xf32>
    %54 = vector.broadcast %53 : vector<8x8x1xf32> to vector<8x8x8xf32>
    %55 = arith.mulf %50, %54 : vector<8x8x8xf32>
    %56 = vector.extract_strided_slice %16 {offsets = [0, 0, 8], sizes = [8, 8, 8], strides = [1, 1, 1]} : vector<8x8x32xf32> to vector<8x8x8xf32>
    "tpu.trace_start"() <{level = 10 : i32, message = "bqk,bkd->bqd"}> : () -> ()
    %cst_31 = arith.constant dense<0.000000e+00> : vector<8x8x8xf32>
    %57 = tpu.matmul %55, %56, %cst_31 {dimension_numbers = #tpu.dot_dimension_numbers<[2], [1], [1], [2], [0, 0, 0, 1, 1, 2], [0], [0]>} : vector<8x8x8xf32>, vector<8x8x8xf32>, vector<8x8x8xf32> -> vector<8x8x8xf32>
    "tpu.trace_stop"() : () -> ()
    %58 = vector.shape_cast %57 : vector<8x8x8xf32> to vector<64x8xf32>
    %c0_32 = arith.constant 0 : index
    %c8 = arith.constant 8 : index
    %59 = vector.load %arg10[%c0_32, %c8] : memref<64x32xf32, #tpu.memory_space<vmem>>, vector<64x8xf32>
    tpu.vector_store %arg10[%c0_32, %c8], %58 {strides = array<i32>} : memref<64x32xf32, #tpu.memory_space<vmem>>, vector<64x8xf32>,
    %60 = vector.extract_strided_slice %14 {offsets = [0, 0, 16], sizes = [8, 8, 8], strides = [1, 1, 1]} : vector<8x8x32xf32> to vector<8x8x8xf32>
    %61 = vector.extract_strided_slice %15 {offsets = [0, 0, 16], sizes = [8, 8, 8], strides = [1, 1, 1]} : vector<8x8x32xf32> to vector<8x8x8xf32>
    "tpu.trace_start"() <{level = 10 : i32, message = "bqd,bkd->bqk"}> : () -> ()
    %cst_33 = arith.constant dense<0.000000e+00> : vector<8x8x8xf32>
    %62 = tpu.matmul %60, %61, %cst_33 {dimension_numbers = #tpu.dot_dimension_numbers<[2], [2], [1], [1], [0, 0, 0, 1, 1, 1], [0], [0]>} : vector<8x8x8xf32>, vector<8x8x8xf32>, vector<8x8x8xf32> -> vector<8x8x8xf32>
    "tpu.trace_stop"() : () -> ()
    %63 = arith.addf %62, %23 : vector<8x8x8xf32>
    %cst_34 = arith.constant dense<0xFF800000> : vector<8x8xf32>
    %64 = vector.multi_reduction <maximumf>, %63, %cst_34 [2] : vector<8x8x8xf32> to vector<8x8xf32>
    %65 = vector.shape_cast %64 : vector<8x8xf32> to vector<8x8x1xf32>
    %66 = vector.broadcast %65 : vector<8x8x1xf32> to vector<8x8x8xf32>
    %67 = arith.subf %63, %66 : vector<8x8x8xf32>
    %68 = math.exp %67 : vector<8x8x8xf32>
    %cst_35 = arith.constant dense<0.000000e+00> : vector<8x8xf32>
    %69 = vector.multi_reduction <add>, %68, %cst_35 [2] : vector<8x8x8xf32> to vector<8x8xf32>
    %70 = vector.shape_cast %69 : vector<8x8xf32> to vector<8x8x1xf32>
    %71 = tpu.reciprocal %70 {approx = true} : vector<8x8x1xf32> -> vector<8x8x1xf32>
    %72 = vector.broadcast %71 : vector<8x8x1xf32> to vector<8x8x8xf32>
    %73 = arith.mulf %68, %72 : vector<8x8x8xf32>
    %74 = vector.extract_strided_slice %16 {offsets = [0, 0, 16], sizes = [8, 8, 8], strides = [1, 1, 1]} : vector<8x8x32xf32> to vector<8x8x8xf32>
    "tpu.trace_start"() <{level = 10 : i32, message = "bqk,bkd->bqd"}> : () -> ()
    %cst_36 = arith.constant dense<0.000000e+00> : vector<8x8x8xf32>
    %75 = tpu.matmul %73, %74, %cst_36 {dimension_numbers = #tpu.dot_dimension_numbers<[2], [1], [1], [2], [0, 0, 0, 1, 1, 2], [0], [0]>} : vector<8x8x8xf32>, vector<8x8x8xf32>, vector<8x8x8xf32> -> vector<8x8x8xf32>
    "tpu.trace_stop"() : () -> ()
    %76 = vector.shape_cast %75 : vector<8x8x8xf32> to vector<64x8xf32>
    %c0_37 = arith.constant 0 : index
    %c16 = arith.constant 16 : index
    %77 = vector.load %arg10[%c0_37, %c16] : memref<64x32xf32, #tpu.memory_space<vmem>>, vector<64x8xf32>
    tpu.vector_store %arg10[%c0_37, %c16], %76 {strides = array<i32>} : memref<64x32xf32, #tpu.memory_space<vmem>>, vector<64x8xf32>,
    %78 = vector.extract_strided_slice %14 {offsets = [0, 0, 24], sizes = [8, 8, 8], strides = [1, 1, 1]} : vector<8x8x32xf32> to vector<8x8x8xf32>
    %79 = vector.extract_strided_slice %15 {offsets = [0, 0, 24], sizes = [8, 8, 8], strides = [1, 1, 1]} : vector<8x8x32xf32> to vector<8x8x8xf32>
    "tpu.trace_start"() <{level = 10 : i32, message = "bqd,bkd->bqk"}> : () -> ()
    %cst_38 = arith.constant dense<0.000000e+00> : vector<8x8x8xf32>
    %80 = tpu.matmul %78, %79, %cst_38 {dimension_numbers = #tpu.dot_dimension_numbers<[2], [2], [1], [1], [0, 0, 0, 1, 1, 1], [0], [0]>} : vector<8x8x8xf32>, vector<8x8x8xf32>, vector<8x8x8xf32> -> vector<8x8x8xf32>
    "tpu.trace_stop"() : () -> ()
    %81 = arith.addf %80, %23 : vector<8x8x8xf32>
    %cst_39 = arith.constant dense<0xFF800000> : vector<8x8xf32>
    %82 = vector.multi_reduction <maximumf>, %81, %cst_39 [2] : vector<8x8x8xf32> to vector<8x8xf32>
    %83 = vector.shape_cast %82 : vector<8x8xf32> to vector<8x8x1xf32>
    %84 = vector.broadcast %83 : vector<8x8x1xf32> to vector<8x8x8xf32>
    %85 = arith.subf %81, %84 : vector<8x8x8xf32>
    %86 = math.exp %85 : vector<8x8x8xf32>
    %cst_40 = arith.constant dense<0.000000e+00> : vector<8x8xf32>
    %87 = vector.multi_reduction <add>, %86, %cst_40 [2] : vector<8x8x8xf32> to vector<8x8xf32>
    %88 = vector.shape_cast %87 : vector<8x8xf32> to vector<8x8x1xf32>
    %89 = tpu.reciprocal %88 {approx = true} : vector<8x8x1xf32> -> vector<8x8x1xf32>
    %90 = vector.broadcast %89 : vector<8x8x1xf32> to vector<8x8x8xf32>
    %91 = arith.mulf %86, %90 : vector<8x8x8xf32>
    %92 = vector.extract_strided_slice %16 {offsets = [0, 0, 24], sizes = [8, 8, 8], strides = [1, 1, 1]} : vector<8x8x32xf32> to vector<8x8x8xf32>
    "tpu.trace_start"() <{level = 10 : i32, message = "bqk,bkd->bqd"}> : () -> ()
    %cst_41 = arith.constant dense<0.000000e+00> : vector<8x8x8xf32>
    %93 = tpu.matmul %91, %92, %cst_41 {dimension_numbers = #tpu.dot_dimension_numbers<[2], [1], [1], [2], [0, 0, 0, 1, 1, 2], [0], [0]>} : vector<8x8x8xf32>, vector<8x8x8xf32>, vector<8x8x8xf32> -> vector<8x8x8xf32>
    "tpu.trace_stop"() : () -> ()
    %94 = vector.shape_cast %93 : vector<8x8x8xf32> to vector<64x8xf32>
    %c0_42 = arith.constant 0 : index
    %c24 = arith.constant 24 : index
    %95 = vector.load %arg10[%c0_42, %c24] : memref<64x32xf32, #tpu.memory_space<vmem>>, vector<64x8xf32>
    tpu.vector_store %arg10[%c0_42, %c24], %94 {strides = array<i32>} : memref<64x32xf32, #tpu.memory_space<vmem>>, vector<64x8xf32>,
    %c0_43 = arith.constant 0 : index
    %c0_44 = arith.constant 0 : index
    %96 = vector.load %arg10[%c0_43, %c0_44] : memref<64x32xf32, #tpu.memory_space<vmem>>, vector<64x32xf32>
    %c0_45 = arith.constant 0 : index
    %c0_46 = arith.constant 0 : index
    %97 = vector.load %arg8[%c0_45, %c0_46] : memref<32x32xf32, #tpu.memory_space<vmem>>, vector<32x32xf32>
    %cst_47 = arith.constant dense<0.000000e+00> : vector<64x32xf32>
    %98 = tpu.matmul %96, %97, %cst_47 {dimension_numbers = #tpu.dot_dimension_numbers<[1], [0], [0], [1], [0, 0, 1, 1], [], []>} : vector<64x32xf32>, vector<32x32xf32>, vector<64x32xf32> -> vector<64x32xf32>
    %99 = vector.shape_cast %98 : vector<64x32xf32> to vector<8x8x32xf32>
    %c0_48 = arith.constant 0 : index
    %c0_49 = arith.constant 0 : index
    %c0_50 = arith.constant 0 : index
    %100 = vector.load %arg9[%c0_48, %c0_49, %c0_50] : memref<8x8x32xf32, #tpu.memory_space<vmem>>, vector<8x8x32xf32>
    tpu.vector_store %arg9[%c0_48, %c0_49, %c0_50], %99 {strides = array<i32>} : memref<8x8x32xf32, #tpu.memory_space<vmem>>, vector<8x8x32xf32>,
    return
  }
  func.func @transform_0(%arg0: i32) -> (i32, i32, i32) {
    %c0_i32 = arith.constant 0 : i32
    %c0_i32_0 = arith.constant 0 : i32
    %c0_i32_1 = arith.constant 0 : i32
    return %arg0, %c0_i32, %c0_i32_0 : i32, i32, i32
  }
  func.func @transform_1(%arg0: i32) -> (i32, i32, i32) {
    %c0_i32 = arith.constant 0 : i32
    %c0_i32_0 = arith.constant 0 : i32
    %c0_i32_1 = arith.constant 0 : i32
    return %arg0, %c0_i32, %c0_i32_0 : i32, i32, i32
  }
  func.func @transform_2(%arg0: i32) -> (i32, i32, i32) {
    %c0_i32 = arith.constant 0 : i32
    %c0_i32_0 = arith.constant 0 : i32
    %c0_i32_1 = arith.constant 0 : i32
    return %arg0, %c0_i32, %c0_i32_0 : i32, i32, i32
  }
  func.func @transform_3(%arg0: i32) -> (i32, i32, i32) {
    %c0_i32 = arith.constant 0 : i32
    %c0_i32_0 = arith.constant 0 : i32
    %c0_i32_1 = arith.constant 0 : i32
    return %arg0, %c0_i32, %c0_i32_0 : i32, i32, i32
  }
  func.func @transform_4(%arg0: i32) -> (i32, i32) {
    %c0_i32 = arith.constant 0 : i32
    %c0_i32_0 = arith.constant 0 : i32
    %c0_i32_1 = arith.constant 0 : i32
    return %c0_i32, %c0_i32_0 : i32, i32
  }
  func.func @transform_5(%arg0: i32) -> (i32, i32) {
    %c0_i32 = arith.constant 0 : i32
    %c0_i32_0 = arith.constant 0 : i32
    %c0_i32_1 = arith.constant 0 : i32
    return %c0_i32, %c0_i32_0 : i32, i32
  }
  func.func @transform_6(%arg0: i32) -> (i32, i32) {
    %c0_i32 = arith.constant 0 : i32
    %c0_i32_0 = arith.constant 0 : i32
    %c0_i32_1 = arith.constant 0 : i32
    return %c0_i32, %c0_i32_0 : i32, i32
  }
  func.func @transform_7(%arg0: i32) -> (i32, i32) {
    %c0_i32 = arith.constant 0 : i32
    %c0_i32_0 = arith.constant 0 : i32
    %c0_i32_1 = arith.constant 0 : i32
    return %c0_i32, %c0_i32_0 : i32, i32
  }
  func.func @transform_8(%arg0: i32) -> (i32, i32, i32) {
    %c0_i32 = arith.constant 0 : i32
    %c0_i32_0 = arith.constant 0 : i32
    %c0_i32_1 = arith.constant 0 : i32
    return %arg0, %c0_i32, %c0_i32_0 : i32, i32, i32
  }
}

</mosaic_0001>

<bundles_post_ra>
// kernel: tpu_custom_call.1
= control target key start
LH: loop header
LB: loop body
LE: loop exit
PB: predicated region body
PF: predicated region fallthrough
CT: control target
= control target key end

     0   :  { %s9345_s0 = inlined_call_operand.vmem [shape: s32[16,1,1], index: 0, kind: input, shape index: {}]   ;;  %s9346_s1 = inlined_call_operand.hbm [shape: f32[16,8,32], index: 1, kind: input, shape index: {}]   ;;  %s9347_s2 = inlined_call_operand.hbm [shape: f32[16,8,32], index: 2, kind: input, shape index: {}]   ;;  %s9348_s3 = inlined_call_operand.hbm [shape: f32[16,8,32], index: 3, kind: input, shape index: {}]   ;;  %s9349_s4 = inlined_call_operand.vmem [shape: f32[32,32], index: 4, kind: input, shape index: {}]   ;;  %s9350_s5 = inlined_call_operand.hbm [shape: f32[32,32], index: 5, kind: input, shape index: {}]   ;;  %s9351_s6 = inlined_call_operand.hbm [shape: f32[32,32], index: 6, kind: input, shape index: {}]   ;;  %s9352_s7 = inlined_call_operand.hbm [shape: f32[32,32], index: 7, kind: input, shape index: {}]   ;;  %s9353_s8 = inlined_call_operand.hbm [shape: f32[16,8,32], index: 8, kind: output, shape index: {}]  }
   0x1   :  { %9382 = sst [smem:[#allocation30_spill]] %s9345_s0 }
   0x2   :  { %9383 = sst [smem:[#allocation31_spill]] %s9347_s2 }
   0x3   :  { %9384 = sst [smem:[#allocation32_spill]] %s9349_s4 }
   0x4   :  { %9385 = sst [smem:[#allocation33_spill]] %s9350_s5 }
   0x5   :  { %9386 = sst [smem:[#allocation34_spill]] %s9353_s8 }
   0x6   :  { %13 = vsyncpa [#allocation4], 0 }
   0x7   :  { %15 = vsyncpa [#allocation4 + $0x1], 0 }
   0x8   :  { %16 = vsyncpa [#allocation7], 0 }
   0x9   :  { %18 = vsyncpa [#allocation7 + $0x1], 0 }
   0xa   :  { %19 = vsyncpa [#allocation10], 0 }
   0xb   :  { %20 = vsyncpa [#allocation13], 0 }
   0xc   :  { %21 = vsyncpa [#allocation5], 0 }
   0xd   :  { %23 = vsyncpa [#allocation5 + $0x1], 0  ;;  %s8009_s27 = smov 0   ;;  %s8011_s28 = smov 0  }
   0xe   :  { %s8013_s29 = smov 0   ;;  %s8015_s30 = smov 0  }
   0xf LB: > { %9387 = sst [smem:[#allocation20_spill]] %s7930_s27  ;;  %s8030_s9 = sadd.s32 4294967295, %s7942_s30   ;;  %s7942_s30 = sphi %s8015_s30, %s9438_s30   ;;  %s7938_s29 = sphi %s8013_s29, %s9442_s29   ;;  %s7934_s28 = sphi %s8011_s28, %s9441_s28   ;;  %s7930_s27 = sphi %s8009_s27, %s9440_s27  }
  0x10   : > { %9388 = sst [smem:[#allocation21_spill]] %s7942_s30  ;;  %s6679_s10 = sadd.s32 4294967294, %s7942_s30  }
  0x11   : > { %s8034_s11 = sadd.s32 1, %s7942_s30   ;;  %s62_s12 = sadd.s32 1, %s7938_s29 }
  0x12   : > { %9389 = sst [smem:[#allocation22_spill]] %s8034_s11  ;;  %s59_s13 = ssub.s32 %s7942_s30, %s8034_s11 }
  0x13   : > { %p69_p0 = scmp.ne.s32.totalorder %s7938_s29, %s7934_s28  ;;  %p60_p1 = scmp.eq.s32.totalorder %s59_s13, 0 }
  0x14   : > { %p70_p2 = scmp.eq.s32.totalorder %s7942_s30, 0  ;;  %p75_p3 = scmp.ne.s32.totalorder %s7934_s28, %s7930_s27 }
  0x15   : > { %p9355_p4 = scmp.eq.s32.totalorder %s8030_s9, 0  ;;  %p235_p7 = scmp.eq.s32.totalorder %s8030_s9, 1 }
  0x16   : > { %s8046_s14 = scalar_select %p60_p1, %s7938_s29, %s62_s12  }
  0x17   : > { %p8048_p5 = por %p70_p2, %p69_p0  ;;  %p8054_p6 = por %p9355_p4, %p75_p3 }
  0x18   : > { %9390 = sst [smem:[#allocation23_spill]] %s8046_s14  ;;  %p241_p8 = scmp.eq.s32.totalorder %s6679_s10, 1 }
  0x19   : > { %s9391_s15 = scalar_select %p8048_p5, 1, 0 }
  0x1a   : > { %s9392_s16 = scalar_select %p8054_p6, 1, 0 }
  0x1b   : > { %p6680_p9 = scmp.ge.s32.totalorder %s7942_s30, 1  ;;  %p248_p10 = scmp.lt.s32.totalorder %s7942_s30, 3 }
  0x1c   : > { %p8061_p11 = por %p235_p7, %p69_p0  ;;  %p8065_p12 = por %p241_p8, %p75_p3 }
  0x1d   : > { %p8069_p13 = pnand %p6680_p9, %p248_p10  ;;  %s7944_s20 = smov [#allocation9]  }
  0x1e   : > { %s9393_s17 = scalar_select %p8061_p11, 1, 0 }
  0x1f   : > { %s9395_s18 = scalar_select %p8065_p12, 1, 0 }
  0x20   : > { %9394 = sst [smem:[#allocation24_spill]] %s9393_s17  ;;  %p7480_p1 = pneg %p8069_p13 }
  0x21   : > { %9396 = sst [smem:[#allocation25_spill]] %s9395_s18  ;;  %s263_s21 = sshll.u32 %s7944_s20, 4  ;;  %s264_s21 = int_to_ptr.vmem [resolvable:$true] %s263_s21 }
  0x22   : > { %s9397_s19 = scalar_select %p8069_p13, 1, 0 }
  0x23   : > { %p8077_p2 = pnand %p7480_p1, %p9355_p4  ;;  %s9354_s23 = sand.u32 1, %s7938_s29  }
  0x24   : > { %s8086_s24 = sshll.u32 %s9354_s23, 6  ;;  %s9399_s5 = sld [smem:[#allocation33_spill]] }
  0x25   : > { %s9398_s22 = scalar_select %p8077_p2, 1, 0 }
  0x26   : > { %p8096_p8 = pneg %p8077_p2 }
  0x28   : > { %s9400_s20 = scalar_select %p8096_p8, 1, 0 }
  0x2a   : > { %s7690_s10 = scalar_lea.hbm %s9399_s5, 512 }
  0x2b   : > { %p7691_p7 = scmp.ne.s32.totalorder %s9399_s5, %s7690_s10  ;;  %p7697_p1 = scmp.lt.u32.totalorder %s7690_s10, %s9399_s5 }
  0x2d   : > { %p7693_p9 = pnand %p8096_p8, %p7691_p7 }
  0x2f   : > { %p7694_p10 = pneg %p7693_p9 }
  0x31   : > { %p7699_p0 = pnand %p7697_p1, %p7694_p10 }
  0x33   : > { %7702 = shalt.err (!%p7699_p0)
}
  0x34   : > { %s7703_s25 = scalar_lea.vmem %s264_s21, 512  ;;  %p7711_p11 = scmp.lt.s32.totalorder %s264_s21, %s264_s21 }
  0x35   : > { %p7704_p4 = scmp.ne.s32.totalorder %s264_s21, %s7703_s25  ;;  %p7712_p6 = scmp.lt.s32.totalorder %s7703_s25, %s7703_s25 }
  0x37   : > { %p7706_p3 = pnand %p7704_p4, %p8096_p8  ;;  %p7713_p13 = por %p7712_p6, %p7711_p11 }
  0x39   : > { %p7707_p12 = pneg %p7706_p3 }
  0x3b   : > { %p7714_p5 = pnand %p7713_p13, %p7707_p12 }
  0x3d   : > { %7717 = shalt.err (!%p7714_p5)
}
  0x3e   : > { %s9363_s26 = smov 128   ;;  %s9365_s14 = smov 8  }
  0x3f   : > { %7483 = dma.hbm_to_vmem [thread:$0]  (!%p8077_p2), %s9399_s5, 512, %s264_s21, [#allocation10], %s9363_s26, %s9363_s26, %s9365_s14  }
  0x40   : > { %s8116_s12 = sshll.u32 %s7942_s30, 10  ;;  %p9401_p4 = scmp.ne.s32.totalorder %s9391_s15, 0 }
  0x41   : > { %p9402_p5 = scmp.lt.s32.totalorder %s7942_s30, 2  ;;  %s332_s25 = sand.u32 1, %s7942_s30  }
  0x42   : > { %s9404_s2 = sld [smem:[#allocation31_spill]]  ;;  %s336_s21 = scalar_lea.vmem [#allocation6], %s8086_s24 }
  0x43   : > { %p8122_p6 = pnand %p9402_p5, %p9401_p4  ;;  %s343_s23 = sshll.u32 %s336_s21, 4  ;;  %s8134_s23 = int_to_ptr.vmem [resolvable:$true] %s343_s23 }
  0x44   : > { %s8136_s15 = scalar_lea.sflag [#allocation7], %s332_s25 }
  0x45   : > { %s9403_s13 = scalar_select %p8122_p6, 1, 0 }
  0x46   : > { %p8142_p12 = pneg %p8122_p6 }
  0x48   : > { %s8131_s27 = scalar_lea.hbm %s9404_s2, %s8116_s12  ;;  %s7723_s14 = scalar_lea.hbm %s9404_s2, 2048 }
  0x49   : > { %s7718_s10 = scalar_lea.hbm %s8131_s27, 1024  ;;  %p7724_p3 = scmp.lt.u32.totalorder %s8131_s27, %s9404_s2 }
  0x4a   : > { %p7719_p11 = scmp.ne.s32.totalorder %s8131_s27, %s7718_s10  ;;  %p7725_p7 = scmp.lt.u32.totalorder %s7723_s14, %s7718_s10 }
  0x4b   : > { %s9405_s26 = scalar_select %p8142_p12, 1, 0 }
  0x4c   : > { %p7721_p13 = pnand %p8142_p12, %p7719_p11  ;;  %p7726_p9 = por %p7725_p7, %p7724_p3 }
  0x4d   : > { %p7727_p10 = scmp.lt.u32.totalorder %s7718_s10, %s8131_s27 }
  0x4e   : > { %p7722_p0 = pneg %p7721_p13 }
  0x4f   : > { %p7728_p1 = por %p7727_p10, %p7726_p9 }
  0x51   : > { %p7729_p4 = pnand %p7728_p1, %p7722_p0 }
  0x53   : > { %7732 = shalt.err (!%p7729_p4)
}
  0x54   : > { %s7733_s25 = scalar_lea.vmem %s8134_s23, 1024  ;;  %s7947_s11 = smov [#allocation6]  }
  0x55   : > { %p7734_p5 = scmp.ne.s32.totalorder %s8134_s23, %s7733_s25  ;;  %s7738_s18 = sshll.u32 %s7947_s11, 4  ;;  %s7739_s18 = int_to_ptr.vmem [resolvable:$false] %s7738_s18 }
  0x56   : > { %s7740_s5 = scalar_lea.vmem %s7739_s18, 2048  ;;  %p7741_p2 = scmp.lt.s32.totalorder %s8134_s23, %s7739_s18 }
  0x57   : > { %p7736_p11 = pnand %p7734_p5, %p8142_p12  ;;  %p7742_p8 = scmp.lt.s32.totalorder %s7740_s5, %s7733_s25 }
  0x59   : > { %p7737_p13 = pneg %p7736_p11  ;;  %p7743_p3 = por %p7742_p8, %p7741_p2 }
  0x5b   : > { %p7744_p7 = pnand %p7743_p3, %p7737_p13 }
  0x5d   : > { %7747 = shalt.err (!%p7744_p7)
}
  0x5e   : > { %s9406_s14 = smov 8   ;;  %s9407_s10 = smov 128  }
  0x5f   : > { %7496 = dma.hbm_to_vmem [thread:$0]  (!%p8122_p6), %s8131_s27, 1024, %s8134_s23, %s8136_s15, %s9407_s10, %s9407_s10, %s9406_s14  }
  0x60   : > { %s7948_s21 = smov [#allocation11]   ;;  %s7949_s11 = smov [#allocation12]  }
  0x61   : > { %s276_s2 = sshll.u32 %s7948_s21, 4  ;;  %s289_s30 = sshll.u32 %s7949_s11, 4  ;;  %s277_s2 = int_to_ptr.vmem [resolvable:$true] %s276_s2  ;;  %s290_s30 = int_to_ptr.vmem [resolvable:$true] %s289_s30 }
  0x62   : > { %s7748_s5 = scalar_lea.hbm %s9351_s6, 512  ;;  %p9408_p8 = scmp.ne.s32.totalorder %s9400_s20, 0 }
  0x63   : > { %p7749_p2 = scmp.ne.s32.totalorder %s9351_s6, %s7748_s5  ;;  %p7755_p10 = scmp.lt.u32.totalorder %s7748_s5, %s9351_s6 }
  0x65   : > { %p7751_p0 = pnand %p7749_p2, %p9408_p8 }
  0x67   : > { %p7752_p9 = pneg %p7751_p0 }
  0x69   : > { %p7757_p1 = pnand %p7755_p10, %p7752_p9 }
  0x6b   : > { %7760 = shalt.err (!%p7757_p1)
}
  0x6c   : > { %s7761_s27 = scalar_lea.vmem %s277_s2, 512  ;;  %p7769_p13 = scmp.lt.s32.totalorder %s277_s2, %s277_s2 }
  0x6d   : > { %p7762_p4 = scmp.ne.s32.totalorder %s277_s2, %s7761_s27  ;;  %p7770_p3 = scmp.lt.s32.totalorder %s7761_s27, %s7761_s27 }
  0x6f   : > { %p7764_p5 = pnand %p7762_p4, %p9408_p8  ;;  %p7771_p7 = por %p7770_p3, %p7769_p13 }
  0x71   : > { %p7765_p11 = pneg %p7764_p5 }
  0x73   : > { %p7772_p6 = pnand %p7771_p7, %p7765_p11 }
  0x75   : > { %7775 = shalt.err (!%p7772_p6)
}
  0x76   : > { %p9409_p2 = scmp.ne.s32.totalorder %s9398_s22, 0  ;;  %s7776_s23 = scalar_lea.hbm %s9352_s7, 512 }
  0x77   : > { %p7777_p0 = scmp.ne.s32.totalorder %s9352_s7, %s7776_s23  ;;  %p7783_p10 = scmp.lt.u32.totalorder %s7776_s23, %s9352_s7 }
  0x78   : > { %7486 = dma.hbm_to_vmem [thread:$0]  (!%p9409_p2), %s9351_s6, 512, %s277_s2, [#allocation10], %s9407_s10, %s9407_s10, %s9406_s14  }
  0x79   : > { %p7779_p6 = pnand %p7777_p0, %p9408_p8 }
  0x7b   : > { %p7780_p9 = pneg %p7779_p6 }
  0x7d   : > { %p7785_p1 = pnand %p7783_p10, %p7780_p9 }
  0x7f   : > { %7788 = shalt.err (!%p7785_p1)
}
  0x80   : > { %s7789_s5 = scalar_lea.vmem %s290_s30, 512  ;;  %p7797_p13 = scmp.lt.s32.totalorder %s290_s30, %s290_s30 }
  0x81   : > { %p7790_p4 = scmp.ne.s32.totalorder %s290_s30, %s7789_s5  ;;  %p7798_p3 = scmp.lt.s32.totalorder %s7789_s5, %s7789_s5 }
  0x83   : > { %p7792_p5 = pnand %p7790_p4, %p9408_p8  ;;  %p7799_p7 = por %p7798_p3, %p7797_p13 }
  0x85   : > { %p7793_p11 = pneg %p7792_p5 }
  0x87   : > { %p7800_p12 = pnand %p7799_p7, %p7793_p11 }
  0x89   : > { %7803 = shalt.err (!%p7800_p12)
}
  0x8a   : > { %7489 = dma.hbm_to_vmem [thread:$0]  (!%p9409_p2), %s9352_s7, 512, %s290_s30, [#allocation13], %s9407_s10, %s9407_s10, %s9406_s14  }
  0x8b   : > { %s8215_s4 = scalar_lea.hbm %s9346_s1, %s8116_s12  ;;  %s315_s22 = scalar_lea.vmem [#allocation3], %s8086_s24 }
  0x8c   : > { %s322_s8 = sshll.u32 %s315_s22, 4  ;;  %s8224_s21 = scalar_lea.hbm %s9348_s3, %s8116_s12  ;;  %s8218_s8 = int_to_ptr.vmem [resolvable:$true] %s322_s8 }
  0x8d   : > { %s9410_s11 = sand.u32 1, %s7938_s29   ;;  %s7804_s18 = scalar_lea.hbm %s8215_s4, 1024 }
  0x8e   : > { %s8228_s30 = scalar_lea.sflag [#allocation4], %s9410_s11  ;;  %p7805_p12 = scmp.ne.s32.totalorder %s8215_s4, %s7804_s18 }
  0x8f   : > { %p9411_p8 = scmp.ne.s32.totalorder %s9405_s26, 0  ;;  %s7809_s2 = scalar_lea.hbm %s9346_s1, 2048 }
  0x90   : > { %p7810_p6 = scmp.lt.u32.totalorder %s8215_s4, %s9346_s1  ;;  %p7811_p9 = scmp.lt.u32.totalorder %s7809_s2, %s7804_s18 }
  0x91   : > { %p7807_p2 = pnand %p7805_p12, %p9411_p8  ;;  %p7813_p1 = scmp.lt.u32.totalorder %s7804_s18, %s8215_s4 }
  0x92   : > { %p7812_p10 = por %p7811_p9, %p7810_p6 }
  0x93   : > { %p7808_p0 = pneg %p7807_p2 }
  0x94   : > { %p7814_p4 = por %p7813_p1, %p7812_p10 }
  0x96   : > { %p7815_p5 = pnand %p7814_p4, %p7808_p0 }
  0x98   : > { %7818 = shalt.err (!%p7815_p5)
}
  0x99   : > { %s7819_s12 = scalar_lea.vmem %s8218_s8, 1024  ;;  %s7950_s0 = smov [#allocation3]  }
  0x9a   : > { %p7820_p11 = scmp.ne.s32.totalorder %s8218_s8, %s7819_s12  ;;  %s7824_s22 = sshll.u32 %s7950_s0, 4  ;;  %s7825_s22 = int_to_ptr.vmem [resolvable:$false] %s7824_s22 }
  0x9b   : > { %s7826_s17 = scalar_lea.vmem %s7825_s22, 2048  ;;  %p7827_p7 = scmp.lt.s32.totalorder %s8218_s8, %s7825_s22 }
  0x9c   : > { %p7822_p13 = pnand %p7820_p11, %p9411_p8  ;;  %p7828_p12 = scmp.lt.s32.totalorder %s7826_s17, %s7819_s12 }
  0x9e   : > { %p7823_p3 = pneg %p7822_p13  ;;  %p7829_p2 = por %p7828_p12, %p7827_p7 }
  0xa0   : > { %p7830_p6 = pnand %p7829_p2, %p7823_p3 }
  0xa2   : > { %7833 = shalt.err (!%p7830_p6)
}
  0xa3   : > { %p9412_p0 = scmp.ne.s32.totalorder %s9403_s13, 0  ;;  %s357_s23 = scalar_lea.vmem [#allocation8], %s8086_s24 }
  0xa4   : > { %s364_s11 = sshll.u32 %s357_s23, 4  ;;  %s7834_s18 = scalar_lea.hbm %s8224_s21, 1024  ;;  %s8256_s11 = int_to_ptr.vmem [resolvable:$true] %s364_s11 }
  0xa5   : > { %7493 = dma.hbm_to_vmem [thread:$0]  (!%p9412_p0), %s8215_s4, 1024, %s8218_s8, %s8228_s30, %s9407_s10, %s9407_s10, %s9406_s14  }
  0xa6   : > { %p7835_p9 = scmp.ne.s32.totalorder %s8224_s21, %s7834_s18  ;;  %s7839_s2 = scalar_lea.hbm %s9348_s3, 2048 }
  0xa7   : > { %p7840_p4 = scmp.lt.u32.totalorder %s8224_s21, %s9348_s3  ;;  %p7841_p5 = scmp.lt.u32.totalorder %s7839_s2, %s7834_s18 }
  0xa8   : > { %p7837_p10 = pnand %p7835_p9, %p9411_p8  ;;  %p7843_p13 = scmp.lt.u32.totalorder %s7834_s18, %s8224_s21 }
  0xa9   : > { %p7842_p11 = por %p7841_p5, %p7840_p4 }
  0xaa   : > { %p7838_p1 = pneg %p7837_p10 }
  0xab   : > { %p7844_p3 = por %p7843_p13, %p7842_p11 }
  0xad   : > { %p7845_p7 = pnand %p7844_p3, %p7838_p1 }
  0xaf   : > { %7848 = shalt.err (!%p7845_p7)
}
  0xb0   : > { %s7849_s24 = scalar_lea.vmem %s8256_s11, 1024  ;;  %s7951_s4 = smov [#allocation8]  }
  0xb1   : > { %p7850_p12 = scmp.ne.s32.totalorder %s8256_s11, %s7849_s24  ;;  %s7854_s8 = sshll.u32 %s7951_s4, 4  ;;  %s7855_s8 = int_to_ptr.vmem [resolvable:$false] %s7854_s8 }
  0xb2   : > { %s7856_s30 = scalar_lea.vmem %s7855_s8, 2048  ;;  %p7857_p9 = scmp.lt.s32.totalorder %s8256_s11, %s7855_s8 }
  0xb3   : > { %p7852_p2 = pnand %p7850_p12, %p9411_p8  ;;  %p7858_p10 = scmp.lt.s32.totalorder %s7856_s30, %s7849_s24 }
  0xb5   : > { %p7853_p6 = pneg %p7852_p2  ;;  %p7859_p4 = por %p7858_p10, %p7857_p9 }
  0xb7   : > { %p7860_p5 = pnand %p7859_p4, %p7853_p6 }
  0xb9   : > { %7863 = shalt.err (!%p7860_p5)
}
  0xba   : > { %7499 = dma.hbm_to_vmem [thread:$0]  (!%p9412_p0), %s8224_s21, 1024, %s8256_s11, %s8136_s15, %s9407_s10, %s9407_s10, %s9406_s14  }
  0xbb   : > { %p9413_p8 = scmp.ne.s32.totalorder %s9397_s19, 0 }
  0xbd   : > { %376 = sbr.rel (%p9413_p8) target bundleno = 3297 (0xce1), region = 52 }
  0xc4   : > { %s8286_s26 = sand.u32 1, %s7934_s28   ;;  %p9414_p1 = scmp.ne.s32.totalorder %s9392_s16, 0 }
  0xc5   : > { %s8289_s12 = sshll.u32 %s8286_s26, 6  ;;  %s379_s13 = scalar_lea.sflag [#allocation4], %s8286_s26 }
  0xc6   : > { %s8293_s0 = scalar_lea.vmem [#allocation3], %s8289_s12 }
  0xc7   : > { %7909 = dma.done.wait (%p9414_p1), %s379_s13, 1024  }
  0xc8   : > { %7911 = vsyncadd (%p9414_p1), %s379_s13, 4294966272  ;;  %s387_s19 = sand.u32 1, %s8030_s9   ;;  %s8301_s14 = scalar_lea.vmem [#allocation6], %s8289_s12 }
  0xc9   : > { %s388_s15 = scalar_lea.sflag [#allocation7], %s387_s19 }
  0xca   : > { %7913 = dma.done.wait (%p9414_p1), %s388_s15, 2048  }
  0xcb   : > { %7915 = vsyncadd (%p9414_p1), %s388_s15, 4294965248  ;;  %s8308_s10 = scalar_lea.vmem [#allocation8], %s8289_s12  ;;  %p9415_p0 = scmp.eq.s32.totalorder %s8030_s9, 0 }
  0xcd   : > { %7917 = dma.done.wait (%p9415_p0), [#allocation10], 1024   ;;  %p9416_p11 = pmov %p9415_p0 }
  0xce   : > { %p9417_p13 = pmov %p9415_p0 }
  0xcf   : > { %7919 = vsyncadd (%p9416_p11), [#allocation10], 4294966272 }
  0xd0   : > { %7921 = dma.done.wait (%p9417_p13), [#allocation13], 512   ;;  %p9418_p3 = pmov %p9415_p0 }
  0xd1   : > { %vm496_vm0 = vcmask 261120   ;;  %s9419_s22 = sld [smem:[#allocation32_spill]]  ;;  %v472_v5 = vld [vmem:[%s8293_s0 + $0x20] sm:$0xff]  ;;  %v635_v8 = vld [vmem:[#allocation9 + $0x8] sm:$0xff]  ;;  %v636_v11 = vld [vmem:[#allocation9 + $0x10] sm:$0xff]  ;;  %v9380_v38 = vmov 0.0  }
  0xd2   : > { %7923 = vsyncadd (%p9418_p3), [#allocation13], 4294966784  ;;  %7038 = vmatprep.mubr.msk.f32.mxu1 %vm496_vm0, %v472_v5  ;;  %v634_v7 = vld [vmem:[#allocation9] sm:$0xff]  ;;  %v637_v12 = vld [vmem:[#allocation9 + $0x18] sm:$0xff]  ;;  %vm7953_vm1 = vmmov 0   ;;  %s6702_s2 = sshll.u32 %s8030_s9, 3 }
  0xd3   : > { %v468_v9 = vld [vmem:[%s8293_s0] sm:$0xff]  ;;  %v7432_v10 = vpack.c.bf16 %v635_v8, %v634_v7  ;;  %v473_v13 = vld [vmem:[%s8293_s0 + $0x28] sm:$0xff]  ;;  %v474_v17 = vld [vmem:[%s8293_s0 + $0x30] sm:$0xff]  ;;  %v7436_v18 = vpack.c.bf16 %v637_v12, %v636_v11  ;;  %v7954_v43 = vmov 0   ;;  %p460_p7 = scmp.lt.s32.totalorder %s6702_s2, 15  ;;  %s9420_s24 = sld [smem:[#allocation30_spill]] }
  0xd4   : > { %7032 = vmatprep.mubr.msk.f32.mxu0 %vm496_vm0, %v468_v9  ;;  %v469_v14 = vld [vmem:[%s8293_s0 + $0x8] sm:$0xff]  ;;  %v767_v15 = vld [vmem:[#allocation11] sm:$0xff]  ;;  %v470_v19 = vld [vmem:[%s8293_s0 + $0x10] sm:$0xff]  ;;  %7560 = vset.pattern.permute.xlu0 %v7954_v43  ;;  %vm982_vm2 = vcmask 64512   ;;  %s7956_s8 = smov 120   ;;  %s7957_s30 = smov 112  }
  0xd5   : > { %v768_v16 = vld [vmem:[#allocation11 + $0x8] sm:$0xff]  ;;  %v475_v21 = vld [vmem:[%s8293_s0 + $0x38] sm:$0xff]  ;;  %v476_v23 = vld [vmem:[%s8301_s14] sm:$0xff]  ;;  %7561 = vset.pattern.permute.xlu1 %v7954_v43  ;;  %s9444_s2 = smov (!%p460_p7, %s6702_s2), 15  ;;  %s7958_s13 = smov 104   ;;  %vm3631_vm11 = vcmask 130112  }
  0xd6   : > { %v7440_v20 = vpack.c.bf16 %v768_v16, %v767_v15  ;;  %v471_v22 = vld [vmem:[%s8293_s0 + $0x18] sm:$0xff]  ;;  %v477_v24 = vld [vmem:[%s8301_s14 + $0x8] sm:$0xff]  ;;  %v478_v25 = vld [vmem:[%s8301_s14 + $0x10] sm:$0xff]  ;;  %s7959_s0 = smov 8   ;;  %s7960_s19 = smov 16   ;;  %vm4992_vm12 = vcmask 195712  }
  0xd7   : > { %v492_v0 = vld [vmem:[%s9419_s22] sm:$0xff]  ;;  %v493_v1 = vld [vmem:[%s9419_s22 + $0x8] sm:$0xff]  ;;  %v494_v2 = vld [vmem:[%s9419_s22 + $0x10] sm:$0xff]  ;;  %s7961_s15 = smov 24   ;;  %vm6353_vm13 = vcmask 261312   ;;  %s6847_s21 = sshll.u32 %s8030_s9, 10 }
  0xd8   : > { %v7424_v3 = vpack.c.bf16 %v493_v1, %v492_v0  ;;  %v495_v4 = vld [vmem:[%s9419_s22 + $0x18] sm:$0xff]  ;;  %v480_v27 = vld [vmem:[%s8301_s14 + $0x20] sm:$0xff]  ;;  %v481_v28 = vld [vmem:[%s8301_s14 + $0x28] sm:$0xff]  ;;  %s9431_s23 = sld [smem:[#allocation34_spill]]  ;;  %s6512_s18 = scalar_lea.sflag [#allocation5], %s8286_s26 }
  0xd9   : > { %v7428_v6 = vpack.c.bf16 %v495_v4, %v494_v2  ;;  %v479_v26 = vld [vmem:[%s8301_s14 + $0x18] sm:$0xff]  ;;  %v482_v29 = vld [vmem:[%s8301_s14 + $0x30] sm:$0xff]  ;;  %v484_v34 = vld [vmem:[%s8308_s10] sm:$0xff]  ;;  %s462_s4 = scalar_lea.vmem %s9420_s24, %s9444_s2  ;;  %s7962_s25 = smov [#allocation14]  }
  0xda   : > { %7456 = vmatprep.subr.bf16.mxu1 %v7424_v3  ;;  %7425 = vmatprep.subr.bf16.mxu0 %v7424_v3  ;;  %v483_v30 = vld [vmem:[%s8301_s14 + $0x38] sm:$0xff]  ;;  %v769_v31 = vld [vmem:[#allocation11 + $0x10] sm:$0xff]  ;;  %v485_v35 = vld [vmem:[%s8308_s10 + $0x8] sm:$0xff]  ;;  %s458_s14 = scalar_lea.vmem [#allocation14], %s8289_s12  ;;  %s7868_s5 = sshll.u32 %s7962_s25, 4  ;;  %s7869_s5 = int_to_ptr.vmem [resolvable:$false] %s7868_s5 }
  0xdb   : > { %7458 = vmatpush3.bf16.msra.mxu1 %v7424_v3  ;;  %7427 = vmatpush3.bf16.msra.mxu0 %v7424_v3  ;;  %v770_v32 = vld [vmem:[#allocation11 + $0x18] sm:$0xff]  ;;  %v486_v36 = vld [vmem:[%s8308_s10 + $0x10] sm:$0xff]  ;;  %v488_v39 = vld [vmem:[%s8308_s10 + $0x20] sm:$0xff]  ;;  %s6525_s16 = sshll.u32 %s458_s14, 4  ;;  %s7870_s2 = scalar_lea.vmem %s7869_s5, 2048  ;;  %s9293_s16 = int_to_ptr.vmem [resolvable:$true] %s6525_s16 }
  0xdc   : > { %7457 = vmatprep.subr.bf16.mxu1 %v7428_v6  ;;  %7429 = vmatprep.subr.bf16.mxu0 %v7428_v6  ;;  %v7444_v33 = vpack.c.bf16 %v770_v32, %v769_v31  ;;  %v487_v37 = vld [vmem:[%s8308_s10 + $0x18] sm:$0xff]  ;;  %v489_v40 = vld [vmem:[%s8308_s10 + $0x28] sm:$0xff]  ;;  %v490_v41 = vld [vmem:[%s8308_s10 + $0x30] sm:$0xff]  ;;  %s7864_s9 = scalar_lea.vmem %s9293_s16, 1024  ;;  %p7871_p10 = scmp.lt.s32.totalorder %s9293_s16, %s7869_s5 }
  0xdd   : > { %v491_v42 = vld [vmem:[%s8308_s10 + $0x38] sm:$0xff]  ;;  %v6727_v44 = vld [vmem:[%s462_s4] ss:$0 sm:$0xff]  ;;  %v6729_v45 = vld [vmem:[%s462_s4 + $0x2] ss:$0 sm:$0xff]  ;;  %s9430_s10 = sld [smem:[#allocation24_spill]]  ;;  %p7865_p12 = scmp.ne.s32.totalorder %s9293_s16, %s7864_s9 }
  0xde   : > { %943 = vperm.xlu0 %7560, %v6727_v44   ;;  %949 = vperm.xlu1 %7561, %v6729_v45   ;;  %v6728_v46 = vld [vmem:[%s462_s4 + $0x1] ss:$0 sm:$0xff]  ;;  %v6730_v47 = vld [vmem:[%s462_s4 + $0x3] ss:$0 sm:$0xff]  ;;  %v6731_v48 = vld [vmem:[%s462_s4 + $0x4] ss:$0 sm:$0xff]  ;;  %s9298_s11 = scalar_lea.hbm %s9431_s23, %s6847_s21  ;;  %p7872_p4 = scmp.lt.s32.totalorder %s7870_s2, %s7864_s9 }
  0xdf   : > { %7459 = vmatpush3.bf16.msra.mxu1 %v7428_v6  ;;  %7431 = vmatpush3.bf16.msra.mxu0 %v7428_v6  ;;  %v6732_v49 = vld [vmem:[%s462_s4 + $0x5] ss:$0 sm:$0xff]  ;;  %v6733_v50 = vld [vmem:[%s462_s4 + $0x6] ss:$0 sm:$0xff]  ;;  %v6734_v51 = vld [vmem:[%s462_s4 + $0x7] ss:$0 sm:$0xff] }
  0xe0   : > { %7433 = vmatprep.subr.bf16.mxu1 %v7432_v10  ;;  %7441 = vmatprep.subr.bf16.mxu0 %v7440_v20  ;;  %p7873_p5 = por %p7872_p4, %p7871_p10 }
  0xe2   : > { %7039 = vmatmul.mubr.msk.f32.vlgmr.msra.gmra.mrb[0].mxu1 %vm496_vm0, %v473_v13  ;;  %7033 = vmatmul.mubr.msk.f32.vlgmr.msra.gmra.mrb[0].mxu0 %vm496_vm0, %v469_v14 }
  0xe3   : > { %7435 = vmatpush3.bf16.msra.mxu1 %v7432_v10  ;;  %7041 = vmatprep.mubr.msk.f32.mxu1 %vm496_vm0, %v474_v17  ;;  %p9432_p2 = scmp.ne.s32.totalorder %s9430_s10, 0 }
  0xe4   : > { %7437 = vmatprep.subr.bf16.mxu1 %v7436_v18  ;;  %7035 = vmatprep.mubr.msk.f32.mxu0 %vm496_vm0, %v470_v19 }
  0xe5   : > { %7443 = vmatpush3.bf16.msra.mxu0 %v7440_v20  ;;  %946 = vperm.xlu0 %7560, %v6728_v46   ;;  %v900_v20 = vlaneseq  ;;  %p7866_p6 = pnand %p7865_p12, %p9432_p2 }
  0xe6   : > { %7042 = vmatmul.mubr.msk.f32.gmra.mrb[2].mxu1 %vm496_vm0, %v475_v21  ;;  %7036 = vmatmul.mubr.msk.f32.gmra.mrb[2].mxu0 %vm496_vm0, %v471_v22 }
  0xe7   : > { %7439 = vmatpush3.bf16.msra.mxu1 %v7436_v18  ;;  %7052 = vmatprep.mubr.msk.f32.mxu1 %vm496_vm0, %v476_v23  ;;  %v901_v22 = vand.u32 127, %v900_v20  ;;  %p7867_p9 = pneg %p7866_p6 }
  0xe8   : > { %7445 = vmatprep.subr.bf16.mxu0 %v7444_v33  ;;  %7072 = vmatprep.mubr.msk.f32.mxu0 %vm496_vm0, %v484_v34 }
  0xe9   : > { %7447 = vmatpush3.bf16.msra.mxu0 %v7444_v33  ;;  %7084 = vmatprep.subr.mxu1 %v9380_v38  ;;  %p7874_p8 = pnand %p7873_p5, %p7867_p9 }
  0xea   : > { %7053 = vmatmul.mubr.msk.f32.vlgmr.msra.gmra.mrb[4].mxu1 %vm496_vm0, %v477_v24  ;;  %7104 = vmatprep.subr.mxu0 %v9380_v38 }
  0xeb   : > { %7055 = vmatprep.mubr.msk.f32.mxu1 %vm496_vm0, %v478_v25  ;;  %952 = vperm.xlu1 %7561, %v6730_v47   ;;  %v7955_v25 = vmov -1000000.0  }
  0xec   : > { %7073 = vmatmul.mubr.msk.f32.vlgmr.msra.gmra.mrb[4].mxu0 %vm496_vm0, %v485_v35  ;;  %955 = vperm.xlu0 %7560, %v6731_v48  }
  0xed   : > { %7075 = vmatprep.mubr.msk.f32.mxu0 %vm496_vm0, %v486_v36 }
  0xee   : > { %7056 = vmatmul.mubr.msk.f32.gmra.mrb[6].mxu1 %vm496_vm0, %v479_v26 }
  0xef   : > { %7058 = vmatprep.mubr.msk.f32.mxu1 %vm496_vm0, %v480_v27  ;;  %958 = vperm.xlu1 %7561, %v6732_v49  }
  0xf0   : > { %7076 = vmatmul.mubr.msk.f32.gmra.mrb[6].mxu0 %vm496_vm0, %v487_v37  ;;  %961 = vperm.xlu0 %7560, %v6733_v50  }
  0xf1   : > { %7078 = vmatprep.mubr.msk.f32.mxu0 %vm496_vm0, %v488_v39 }
  0xf2   : > { %7059 = vmatmul.mubr.msk.f32.gmra.mrb[8].mxu1 %vm496_vm0, %v481_v28 }
  0xf3   : > { %7061 = vmatprep.mubr.msk.f32.mxu1 %vm496_vm0, %v482_v29  ;;  %964 = vperm.xlu1 %7561, %v6734_v51  }
  0xf4   : > { %7079 = vmatmul.mubr.msk.f32.gmra.mrb[8].mxu0 %vm496_vm0, %v489_v40 }
  0xf5   : > { %7081 = vmatprep.mubr.msk.f32.mxu0 %vm496_vm0, %v490_v41 }
  0xf6   : > { %7062 = vmatmul.mubr.msk.f32.gmra.mrb[10].mxu1 %vm496_vm0, %v483_v30 }
  0xf7   : > { %7086 = vmatprep.mubr.msk.f32.mxu1 %vm7953_vm1, %v9380_v38 }
  0xf8   : > { %7082 = vmatmul.mubr.msk.f32.gmra.mrb[10].mxu0 %vm496_vm0, %v491_v42 }
  0xf9   : > { %7106 = vmatprep.mubr.msk.f32.mxu0 %vm7953_vm1, %v9380_v38 }
 0x15d   : > { %v944_v21 = vpop.permute.xlu0 %943  ;;  %v950_v24 = vpop.permute.xlu1 %949 }
 0x15e   : > { %vm966_vm3 = vcmp.lt.s32.totalorder %v901_v22, %v944_v21  ;;  %vm968_vm5 = vcmp.lt.s32.totalorder %v901_v22, %v950_v24 }
 0x15f   : > { %v8496_v26 = vsel %vm966_vm3, 0.0, %v7955_v25  ;;  %v8506_v37 = vsel %vm968_vm5, 0.0, %v7955_v25 }
 0x164   : > { %v947_v23 = vpop.permute.xlu0 %946 }
 0x165   : > { %vm967_vm4 = vcmp.lt.s32.totalorder %v901_v22, %v947_v23 }
 0x166   : > { %v8501_v32 = vsel %vm967_vm4, 0.0, %v7955_v25 }
 0x16a   : > { %v953_v31 = vpop.permute.xlu1 %952 }
 0x16b   : > { %v956_v28 = vpop.permute.xlu0 %955  ;;  %vm969_vm7 = vcmp.lt.s32.totalorder %v901_v22, %v953_v31 }
 0x16c   : > { %vm970_vm6 = vcmp.lt.s32.totalorder %v901_v22, %v956_v28  ;;  %v8515_v51 = vsel %vm969_vm7, 0.0, %v7955_v25 }
 0x16d   : > { %v8509_v42 = vsel %vm970_vm6, 0.0, %v7955_v25 }
 0x16e   : > { %v959_v41 = vpop.permute.xlu1 %958 }
 0x16f   : > { %v962_v39 = vpop.permute.xlu0 %961  ;;  %vm971_vm9 = vcmp.lt.s32.totalorder %v901_v22, %v959_v41 }
 0x170   : > { %vm972_vm8 = vcmp.lt.s32.totalorder %v901_v22, %v962_v39  ;;  %v8523_v23 = vsel %vm971_vm9, 0.0, %v7955_v25 }
 0x1b5   : > { %v7040_v52 = vpop.f32.mrb[0].mxu1  ;;  %v7034_v53 = vpop.f32.mrb[0].mxu0 }
 0x1b6   : > { %v607_v54 = vpop.f32.mrb[1].mxu1  ;;  %v587_v55 = vpop.f32.mrb[1].mxu0  ;;  %v8407_v1 = vmul.f32 0.35355338, %v7034_v53  ;;  %v8458_v10 = vmul.f32 0.35355338, %v7040_v52 }
 0x1b7   : > { %v8392_v62 = vmul.f32 0.35355338, %v587_v55  ;;  %v8422_v5 = vmul.f32 0.35355338, %v607_v54  ;;  %v8517_v52 = vsel %vm972_vm8, 0.0, %v7955_v25 }
 0x1b9   : > { %v7043_v56 = vpop.f32.mrb[2].mxu1  ;;  %v7037_v57 = vpop.f32.mrb[2].mxu0 }
 0x1ba   : > { %v617_v58 = vpop.f32.mrb[3].mxu1  ;;  %v597_v59 = vpop.f32.mrb[3].mxu0  ;;  %v8442_v9 = vmul.f32 0.35355338, %v7037_v57  ;;  %v8469_v11 = vmul.f32 0.35355338, %v7043_v56 }
 0x1bb   : > { %v8416_v4 = vmul.f32 0.35355338, %v597_v59  ;;  %v8440_v8 = vmul.f32 0.35355338, %v617_v58  ;;  %v965_v59 = vpop.permute.xlu1 %964 }
 0x1bc   : > { %vm973_vm10 = vcmp.lt.s32.totalorder %v901_v22, %v965_v59 }
 0x1bd   : > { %v8388_v60 = vpop.f32.mrb[4].mxu1  ;;  %v8527_v31 = vsel %vm973_vm10, 0.0, %v7955_v25 }
 0x1be   : > { %v8390_v61 = vpop.f32.mrb[5].mxu1 }
 0x1bf   : > { %7085 = vmatpush3.xpose.msk.msra.mxu1 %vm982_vm2, %v8390_v61  ;;  %v8476_v12 = vpop.f32.mrb[4].mxu0 }
 0x1c0   : > { %7089 = vmatprep.subr.mxu1 %v9380_v38  ;;  %v8480_v13 = vpop.f32.mrb[5].mxu0 }
 0x1c1   : > { %v8397_v63 = vpop.f32.mrb[6].mxu1 }
 0x1c2   : > { %7087 = vmatmul.mubr.msk.f32.vlgmr.msra.gmra.mrb[12].mxu1 %vm982_vm2, %v8392_v62  ;;  %v8401_v0 = vpop.f32.mrb[7].mxu1 }
 0x1c3   : > { %7090 = vmatpush3.xpose.msk.msra.mxu1 %vm982_vm2, %v8388_v60  ;;  %7091 = vmatprep.mubr.msk.f32.mxu1 %vm7953_vm1, %v9380_v38  ;;  %v8484_v14 = vpop.f32.mrb[6].mxu0 }
 0x1c4   : > { %7094 = vmatprep.subr.mxu1 %v9380_v38  ;;  %v8486_v15 = vpop.f32.mrb[7].mxu0 }
 0x1c5   : > { %v8410_v2 = vpop.f32.mrb[8].mxu1 }
 0x1c6   : > { %v8412_v3 = vpop.f32.mrb[9].mxu1  ;;  %7092 = vmatmul.mubr.msk.f32.vlgmr.msra.gmra.mrb[14].mxu1 %vm982_vm2, %v8407_v1 }
 0x1c7   : > { %7095 = vmatpush3.xpose.msk.msra.mxu1 %vm982_vm2, %v8401_v0  ;;  %7105 = vmatpush3.xpose.msk.msra.mxu0 %vm982_vm2, %v8412_v3  ;;  %v8488_v16 = vpop.f32.mrb[8].mxu0 }
 0x1c8   : > { %7096 = vmatprep.mubr.msk.f32.mxu1 %vm7953_vm1, %v9380_v38  ;;  %7099 = vmatprep.subr.mxu1 %v9380_v38  ;;  %v8490_v17 = vpop.f32.mrb[9].mxu0 }
 0x1c9   : > { %v8427_v6 = vpop.f32.mrb[10].mxu1  ;;  %7114 = vmatprep.subr.mxu0 %v9380_v38 }
 0x1ca   : > { %v8430_v7 = vpop.f32.mrb[11].mxu1  ;;  %7097 = vmatmul.mubr.msk.f32.vlgmr.msra.gmra.mrb[16].mxu1 %vm982_vm2, %v8416_v4  ;;  %7107 = vmatmul.mubr.msk.f32.vlgmr.msra.gmra.mrb[12].mxu0 %vm982_vm2, %v8422_v5 }
 0x1cb   : > { %7100 = vmatpush3.xpose.msk.msra.mxu1 %vm982_vm2, %v8397_v63  ;;  %7115 = vmatpush3.xpose.msk.msra.mxu0 %vm982_vm2, %v8430_v7  ;;  %v8492_v18 = vpop.f32.mrb[10].mxu0 }
 0x1cc   : > { %7101 = vmatprep.mubr.msk.f32.mxu1 %vm7953_vm1, %v9380_v38  ;;  %7116 = vmatprep.mubr.msk.f32.mxu0 %vm7953_vm1, %v9380_v38  ;;  %v8494_v19 = vpop.f32.mrb[11].mxu0 }
 0x1cd   : > { %7109 = vmatprep.subr.mxu1 %v9380_v38  ;;  %7124 = vmatprep.subr.mxu0 %v9380_v38 }
 0x1ce   : > { %7102 = vmatmul.mubr.msk.f32.vlgmr.msra.gmra.mrb[18].mxu1 %vm982_vm2, %v8442_v9  ;;  %7117 = vmatmul.mubr.msk.f32.vlgmr.msra.gmra.mrb[14].mxu0 %vm982_vm2, %v8440_v8 }
 0x1cf   : > { %7110 = vmatpush3.xpose.msk.msra.mxu1 %vm982_vm2, %v8410_v2  ;;  %7111 = vmatprep.mubr.msk.f32.mxu1 %vm7953_vm1, %v9380_v38 }
 0x1d0   : > { %7119 = vmatprep.subr.mxu1 %v9380_v38  ;;  %7126 = vmatprep.mubr.msk.f32.mxu0 %vm7953_vm1, %v9380_v38 }
 0x1d1   : > { %7125 = vmatpush3.msra.mxu0 %v8480_v13 }
 0x1d2   : > { %7112 = vmatmul.mubr.msk.f32.vlgmr.msra.gmra.mrb[20].mxu1 %vm982_vm2, %v8458_v10  ;;  %7134 = vmatprep.subr.mxu0 %v9380_v38 }
 0x1d3   : > { %7120 = vmatpush3.xpose.msk.msra.mxu1 %vm982_vm2, %v8427_v6  ;;  %7121 = vmatprep.mubr.msk.f32.mxu1 %vm7953_vm1, %v9380_v38 }
 0x1d4   : > { %7129 = vmatprep.subr.mxu1 %v9380_v38 }
 0x1d6   : > { %7122 = vmatmul.mubr.msk.f32.vlgmr.msra.gmra.mrb[22].mxu1 %vm982_vm2, %v8469_v11 }
 0x1d7   : > { %7131 = vmatprep.mubr.msk.f32.mxu1 %vm7953_vm1, %v9380_v38  ;;  %7130 = vmatpush3.msra.mxu1 %v8476_v12 }
 0x1d8   : > { %7139 = vmatprep.subr.mxu1 %v9380_v38 }
 0x295   : > { %v1055_v27 = vpop.f32.mrb[12].mxu1 }
 0x296   : > { %v8499_v29 = vadd.f32 %v1055_v27, %v8496_v26  ;;  %v7088_v30 = vpop.f32.mrb[13].mxu1 }
 0x298   : > { %v1591_v33 = vsel %vm982_vm2, %v8499_v29, -inf }
 0x299   : > { %1592 = vmax.xlane.f32.xlu0 %v1591_v33  ;;  %v1131_v34 = vpop.f32.mrb[14].mxu1 }
 0x29a   : > { %v1132_v35 = vadd.f32 %v1131_v34, %v8501_v32  ;;  %v7093_v36 = vpop.f32.mrb[15].mxu1 }
 0x29c   : > { %v1594_v40 = vsel %vm982_vm2, %v1132_v35, -inf }
 0x29d   : > { %1595 = vmax.xlane.f32.xlu1 %v1594_v40  ;;  %v1207_v43 = vpop.f32.mrb[16].mxu1  ;;  %v1359_v44 = vpop.f32.mrb[12].mxu0 }
 0x29e   : > { %v1208_v45 = vadd.f32 %v1207_v43, %v8506_v37  ;;  %v1360_v46 = vadd.f32 %v1359_v44, %v8509_v42  ;;  %v7108_v47 = vpop.f32.mrb[13].mxu0  ;;  %v7098_v48 = vpop.f32.mrb[17].mxu1 }
 0x2a0   : > { %v1603_v49 = vsel %vm982_vm2, %v1360_v46, -inf  ;;  %v1597_v50 = vsel %vm982_vm2, %v1208_v45, -inf }
 0x2a1   : > { %1604 = vmax.xlane.f32.xlu1 %v1603_v49  ;;  %v1511_v53 = vpop.f32.mrb[14].mxu0  ;;  %1598 = vmax.xlane.f32.xlu0 %v1597_v50  ;;  %v1283_v54 = vpop.f32.mrb[18].mxu1 }
 0x2a2   : > { %v1512_v55 = vadd.f32 %v1511_v53, %v8517_v52  ;;  %v1284_v56 = vadd.f32 %v1283_v54, %v8515_v51  ;;  %v7118_v57 = vpop.f32.mrb[15].mxu0  ;;  %v7103_v58 = vpop.f32.mrb[19].mxu1 }
 0x2a4   : > { %v1609_v20 = vsel %vm982_vm2, %v1512_v55, -inf  ;;  %v1600_v21 = vsel %vm982_vm2, %v1284_v56, -inf }
 0x2a5   : > { %1610 = vmax.xlane.f32.xlu1 %v1609_v20  ;;  %1601 = vmax.xlane.f32.xlu0 %v1600_v21  ;;  %v1435_v24 = vpop.f32.mrb[20].mxu1 }
 0x2a6   : > { %v1436_v27 = vadd.f32 %v1435_v24, %v8523_v23  ;;  %v7113_v28 = vpop.f32.mrb[21].mxu1 }
 0x2a8   : > { %v1606_v30 = vsel %vm982_vm2, %v1436_v27, -inf }
 0x2a9   : > { %1607 = vmax.xlane.f32.xlu0 %v1606_v30  ;;  %v1587_v33 = vpop.f32.mrb[22].mxu1 }
 0x2aa   : > { %v1588_v34 = vadd.f32 %v1587_v33, %v8527_v31  ;;  %v7123_v36 = vpop.f32.mrb[23].mxu1 }
 0x2ac   : > { %v1612_v39 = vsel %vm982_vm2, %v1588_v34, -inf }
 0x2ad   : > { %1613 = vmax.xlane.f32.xlu0 %v1612_v39 }
 0x2b6   : > { %2273 = vrot.lane.b32.xlu1 %v8390_v61, %s7956_s8 }
 0x2ba   : > { %2271 = vrot.lane.b32.xlu1 %v8392_v62, %s7956_s8 }
 0x2be   : > { %2349 = vrot.lane.b32.xlu1 %v8407_v1, %s7956_s8 }
 0x2c2   : > { %2507 = vrot.lane.b32.xlu1 %v8397_v63, %s7956_s8 }
 0x2c3   : > { %2351 = vrot.lane.b32.xlu0 %v8388_v60, %s7956_s8 }
 0x2c7   : > { %2429 = vrot.lane.b32.xlu0 %v8401_v0, %s7956_s8 }
 0x326   : > { %v1593_v22 = vpop.xlane.xlu0 %1592 }
 0x327   : > { %v1615_v25 = vsub.f32 %v8499_v29, %v1593_v22 }
 0x329   : > { %v1623_v40 = vmul.f32 1.442695, %v1615_v25 }
 0x32a   : > { %v1596_v41 = vpop.xlane.xlu1 %1595 }
 0x32b   : > { %7562 = vpow2.f32 %v1623_v40  ;;  %v1616_v43 = vsub.f32 %v1132_v35, %v1596_v41 }
 0x32d   : > { %v1625_v44 = vmul.f32 1.442695, %v1616_v43 }
 0x32e   : > { %v1605_v47 = vpop.xlane.xlu1 %1604  ;;  %v1599_v48 = vpop.xlane.xlu0 %1598 }
 0x32f   : > { %7564 = vpow2.f32 %v1625_v44  ;;  %v1619_v49 = vsub.f32 %v1360_v46, %v1605_v47  ;;  %v1617_v50 = vsub.f32 %v1208_v45, %v1599_v48 }
 0x331   : > { %v1627_v53 = vmul.f32 1.442695, %v1617_v50  ;;  %v1631_v54 = vmul.f32 1.442695, %v1619_v49 }
 0x332   : > { %v1611_v57 = vpop.xlane.xlu1 %1610  ;;  %v1602_v58 = vpop.xlane.xlu0 %1601 }
 0x333   : > { %v1621_v59 = vsub.f32 %v1512_v55, %v1611_v57  ;;  %v1618_v20 = vsub.f32 %v1284_v56, %v1602_v58  ;;  %7566 = vpow2.f32 %v1627_v53 }
 0x334   : > { %7568 = vpow2.f32 %v1631_v54 }
 0x335   : > { %v7563_v21 = vpop.eup %7562  ;;  %v1629_v24 = vmul.f32 1.442695, %v1618_v20  ;;  %v1635_v29 = vmul.f32 1.442695, %v1621_v59 }
 0x336   : > { %v1608_v28 = vpop.xlane.xlu0 %1607  ;;  %v1639_v35 = vsel %vm982_vm2, %v7563_v21, 0.0  ;;  %v8590_v50 = vpop.permute.xlu1 %2273 }
 0x337   : > { %v1620_v30 = vsub.f32 %v1436_v27, %v1608_v28  ;;  %1640 = vadd.xlane.f32.xlu1 %v1639_v35  ;;  %7570 = vpow2.f32 %v1629_v24 }
 0x338   : > { %7572 = vpow2.f32 %v1635_v29 }
 0x339   : > { %v7565_v33 = vpop.eup %7564  ;;  %v1633_v46 = vmul.f32 1.442695, %v1620_v30 }
 0x33a   : > { %v1614_v45 = vpop.xlane.xlu0 %1613  ;;  %v1642_v36 = vsel %vm982_vm2, %v7565_v33, 0.0  ;;  %v8592_v53 = vpop.permute.xlu1 %2271 }
 0x33b   : > { %7574 = vpow2.f32 %v1633_v46  ;;  %v1622_v55 = vsub.f32 %v1588_v34, %v1614_v45  ;;  %1643 = vadd.xlane.f32.xlu0 %v1642_v36 }
 0x33d   : > { %v1637_v56 = vmul.f32 1.442695, %v1622_v55  ;;  %v8546_v39 = vpop.eup %7566 }
 0x33e   : > { %v1645_v22 = vsel %vm982_vm2, %v8546_v39, 0.0  ;;  %v8550_v25 = vpop.eup %7568  ;;  %v8594_v54 = vpop.permute.xlu1 %2349 }
 0x33f   : > { %7576 = vpow2.f32 %v1637_v56  ;;  %1646 = vadd.xlane.f32.xlu1 %v1645_v22  ;;  %v1651_v40 = vsel %vm982_vm2, %v8550_v25, 0.0  ;;  %v8596_v57 = vpop.permute.xlu0 %2351 }
 0x341   : > { %v8552_v27 = vpop.eup %7570 }
 0x342   : > { %v1648_v41 = vsel %vm982_vm2, %v8552_v27, 0.0  ;;  %v8558_v34 = vpop.eup %7572  ;;  %v8598_v58 = vpop.permute.xlu1 %2507 }
 0x343   : > { %1652 = vadd.xlane.f32.xlu1 %v1651_v40  ;;  %1649 = vadd.xlane.f32.xlu0 %v1648_v41  ;;  %v1657_v47 = vsel %vm982_vm2, %v8558_v34, 0.0  ;;  %v8600_v59 = vpop.permute.xlu0 %2429 }
 0x345   : > { %v8560_v43 = vpop.eup %7574 }
 0x346   : > { %v1654_v44 = vsel %vm982_vm2, %v8560_v43, 0.0 }
 0x347   : > { %1658 = vadd.xlane.f32.xlu1 %v1657_v47  ;;  %1655 = vadd.xlane.f32.xlu0 %v1654_v44 }
 0x349   : > { %v8566_v48 = vpop.eup %7576 }
 0x34a   : > { %v1660_v49 = vsel %vm982_vm2, %v8566_v48, 0.0 }
 0x34b   : > { %1661 = vadd.xlane.f32.xlu0 %v1660_v49 }
 0x358   : > { %2505 = vrot.lane.b32.xlu1 %v8442_v9, %s7956_s8 }
 0x35c   : > { %2663 = vrot.lane.b32.xlu1 %v8410_v2, %s7956_s8 }
 0x360   : > { %2661 = vrot.lane.b32.xlu1 %v8458_v10, %s7956_s8 }
 0x361   : > { %2427 = vrot.lane.b32.xlu0 %v8416_v4, %s7956_s8 }
 0x364   : > { %2819 = vrot.lane.b32.xlu1 %v8427_v6, %s7956_s8 }
 0x365   : > { %2585 = vrot.lane.b32.xlu0 %v8412_v3, %s7956_s8 }
 0x368   : > { %2817 = vrot.lane.b32.xlu1 %v8469_v11, %s7956_s8 }
 0x369   : > { %2583 = vrot.lane.b32.xlu0 %v8422_v5, %s7956_s8 }
 0x36d   : > { %2741 = vrot.lane.b32.xlu0 %v8430_v7, %s7956_s8 }
 0x371   : > { %2739 = vrot.lane.b32.xlu0 %v8440_v8, %s7956_s8 }
 0x3c4   : > { %v1641_v20 = vpop.xlane.xlu1 %1640 }
 0x3c5   : > { %7578 = vrcp.f32 %v1641_v20 }
 0x3c8   : > { %v1644_v24 = vpop.xlane.xlu0 %1643 }
 0x3c9   : > { %7580 = vrcp.f32 %v1644_v24 }
 0x3cc   : > { %v1647_v29 = vpop.xlane.xlu1 %1646 }
 0x3cd   : > { %7582 = vrcp.f32 %v1647_v29 }
 0x3cf   : > { %v7579_v28 = vpop.eup %7578 }
 0x3d0   : > { %v1671_v35 = vmul.f32 %v7579_v28, %v7563_v21  ;;  %v1653_v30 = vpop.xlane.xlu1 %1652  ;;  %v1650_v46 = vpop.xlane.xlu0 %1649 }
 0x3d1   : > { %7584 = vrcp.f32 %v1653_v30 }
 0x3d2   : > { %7127 = vmatmul.mubr.msk.f32.vlgmr.msra.gmra.mrb[16].mxu0 %vm982_vm2, %v1671_v35  ;;  %7586 = vrcp.f32 %v1650_v46 }
 0x3d3   : > { %v7581_v45 = vpop.eup %7580  ;;  %7135 = vmatpush3.msra.mxu0 %v8486_v15  ;;  %7136 = vmatprep.mubr.msk.f32.mxu0 %vm7953_vm1, %v9380_v38 }
 0x3d4   : > { %v1672_v36 = vmul.f32 %v7581_v45, %v7565_v33  ;;  %7144 = vmatprep.subr.mxu0 %v9380_v38  ;;  %v1659_v55 = vpop.xlane.xlu1 %1658  ;;  %v1656_v56 = vpop.xlane.xlu0 %1655 }
 0x3d5   : > { %7588 = vrcp.f32 %v1659_v55 }
 0x3d6   : > { %7132 = vmatmul.mubr.msk.f32.vlgmr.msra.gmra.mrb[24].mxu1 %vm982_vm2, %v1672_v36  ;;  %7590 = vrcp.f32 %v1656_v56 }
 0x3d7   : > { %7140 = vmatpush3.msra.mxu1 %v8484_v14  ;;  %7141 = vmatprep.mubr.msk.f32.mxu1 %vm7953_vm1, %v9380_v38  ;;  %v7583_v21 = vpop.eup %7582 }
 0x3d8   : > { %7149 = vmatprep.subr.mxu1 %v9380_v38  ;;  %v1662_v22 = vpop.xlane.xlu0 %1661  ;;  %v1673_v40 = vmul.f32 %v7583_v21, %v8546_v39  ;;  %v2506_v29 = vpop.permute.xlu1 %2505 }
 0x3d9   : > { %7592 = vrcp.f32 %v1662_v22 }
 0x3da   : > { %7137 = vmatmul.mubr.msk.f32.vlgmr.msra.gmra.mrb[18].mxu0 %vm982_vm2, %v1673_v40 }
 0x3db   : > { %v7585_v33 = vpop.eup %7584  ;;  %7145 = vmatpush3.msra.mxu0 %v8490_v17  ;;  %7146 = vmatprep.mubr.msk.f32.mxu0 %vm7953_vm1, %v9380_v38 }
 0x3dc   : > { %v7587_v41 = vpop.eup %7586  ;;  %v2428_v44 = vpop.permute.xlu0 %2427  ;;  %7154 = vmatprep.subr.mxu0 %v9380_v38  ;;  %v1675_v47 = vmul.f32 %v7585_v33, %v8550_v25 }
 0x3dd   : > { %v1674_v49 = vmul.f32 %v7587_v41, %v8552_v27 }
 0x3de   : > { %7147 = vmatmul.mubr.msk.f32.vlgmr.msra.gmra.mrb[20].mxu0 %vm982_vm2, %v1675_v47 }
 0x3df   : > { %v7589_v39 = vpop.eup %7588  ;;  %7142 = vmatmul.mubr.msk.f32.vlgmr.msra.gmra.mrb[26].mxu1 %vm982_vm2, %v1674_v49  ;;  %7155 = vmatpush3.msra.mxu0 %v8494_v19 }
 0x3e0   : > { %v7591_v20 = vpop.eup %7590  ;;  %7150 = vmatpush3.msra.mxu1 %v8488_v16  ;;  %7151 = vmatprep.mubr.msk.f32.mxu1 %vm7953_vm1, %v9380_v38  ;;  %v1677_v24 = vmul.f32 %v7589_v39, %v8558_v34  ;;  %v2586_v27 = vpop.permute.xlu0 %2585 }
 0x3e1   : > { %7156 = vmatprep.mubr.msk.f32.mxu0 %vm7953_vm1, %v9380_v38  ;;  %7159 = vmatprep.subr.mxu1 %v9380_v38  ;;  %v1676_v25 = vmul.f32 %v7591_v20, %v8560_v43  ;;  %v2664_v43 = vpop.permute.xlu1 %2663 }
 0x3e2   : > { %7157 = vmatmul.mubr.msk.f32.vlgmr.msra.gmra.mrb[22].mxu0 %vm982_vm2, %v1677_v24  ;;  %7164 = vmatprep.subr.mxu0 %v9380_v38 }
 0x3e3   : > { %v7593_v28 = vpop.eup %7592  ;;  %7152 = vmatmul.mubr.msk.f32.vlgmr.msra.gmra.mrb[28].mxu1 %vm982_vm2, %v1676_v25  ;;  %7166 = vmatprep.mubr.msk.f32.mxu0 %vm7953_vm1, %v9380_v38 }
 0x3e4   : > { %7160 = vmatpush3.msra.mxu1 %v8492_v18  ;;  %7161 = vmatprep.mubr.msk.f32.mxu1 %vm7953_vm1, %v9380_v38  ;;  %v1678_v34 = vmul.f32 %v7593_v28, %v8566_v48  ;;  %v2584_v35 = vpop.permute.xlu0 %2583 }
 0x3e5   : > { %7169 = vmatprep.subr.mxu1 %v9380_v38  ;;  %v2662_v48 = vpop.permute.xlu1 %2661 }
 0x3e6   : > { %7165 = vmatpush3.xpose.msk.msra.mxu0 %vm982_vm2, %v8590_v50 }
 0x3e7   : > { %7162 = vmatmul.mubr.msk.f32.vlgmr.msra.gmra.mrb[30].mxu1 %vm982_vm2, %v1678_v34  ;;  %7174 = vmatprep.subr.mxu0 %v9380_v38 }
 0x3e8   : > { %7171 = vmatprep.mubr.msk.f32.mxu1 %vm7953_vm1, %v9380_v38  ;;  %v2742_v50 = vpop.permute.xlu0 %2741 }
 0x3e9   : > { %7167 = vmatmul.mubr.msk.f32.vlgmr.msra.gmra.mrb[24].mxu0 %vm982_vm2, %v8592_v53  ;;  %v2820_v53 = vpop.permute.xlu1 %2819 }
 0x3ea   : > { %7175 = vmatpush3.xpose.msk.msra.mxu0 %vm982_vm2, %v8600_v59  ;;  %7176 = vmatprep.mubr.msk.f32.mxu0 %vm7953_vm1, %v9380_v38 }
 0x3eb   : > { %7170 = vmatpush3.xpose.msk.msra.mxu1 %vm982_vm2, %v8596_v57  ;;  %7184 = vmatprep.subr.mxu0 %v9380_v38 }
 0x3ec   : > { %7179 = vmatprep.subr.mxu1 %v9380_v38 }
 0x3ed   : > { %7177 = vmatmul.mubr.msk.f32.vlgmr.msra.gmra.mrb[26].mxu0 %vm982_vm2, %v2428_v44  ;;  %v2818_v57 = vpop.permute.xlu1 %2817 }
 0x3ee   : > { %7172 = vmatmul.mubr.msk.f32.vlgmr.msra.gmra.mrb[32].mxu1 %vm982_vm2, %v8594_v54  ;;  %7185 = vmatpush3.xpose.msk.msra.mxu0 %vm982_vm2, %v2586_v27  ;;  %v2740_v54 = vpop.permute.xlu0 %2739 }
 0x3ef   : > { %7180 = vmatpush3.xpose.msk.msra.mxu1 %vm982_vm2, %v8598_v58  ;;  %7181 = vmatprep.mubr.msk.f32.mxu1 %vm7953_vm1, %v9380_v38 }
 0x3f0   : > { %7186 = vmatprep.mubr.msk.f32.mxu0 %vm7953_vm1, %v9380_v38  ;;  %7189 = vmatprep.subr.mxu1 %v9380_v38 }
 0x3f1   : > { %7187 = vmatmul.mubr.msk.f32.vlgmr.msra.gmra.mrb[28].mxu0 %vm982_vm2, %v2584_v35  ;;  %7194 = vmatprep.subr.mxu0 %v9380_v38 }
 0x3f2   : > { %7182 = vmatmul.mubr.msk.f32.vlgmr.msra.gmra.mrb[34].mxu1 %vm982_vm2, %v2506_v29  ;;  %7195 = vmatpush3.xpose.msk.msra.mxu0 %vm982_vm2, %v2742_v50 }
 0x3f3   : > { %7190 = vmatpush3.xpose.msk.msra.mxu1 %vm982_vm2, %v2664_v43  ;;  %7191 = vmatprep.mubr.msk.f32.mxu1 %vm7953_vm1, %v9380_v38 }
 0x3f4   : > { %7196 = vmatprep.mubr.msk.f32.mxu0 %vm7953_vm1, %v9380_v38  ;;  %7199 = vmatprep.subr.mxu1 %v9380_v38 }
 0x3f5   : > { %7197 = vmatmul.mubr.msk.f32.vlgmr.msra.gmra.mrb[30].mxu0 %vm982_vm2, %v2740_v54  ;;  %7204 = vmatprep.subr.mxu0 %v9380_v38 }
 0x3f6   : > { %7192 = vmatmul.mubr.msk.f32.vlgmr.msra.gmra.mrb[36].mxu1 %vm982_vm2, %v2662_v48  ;;  %7206 = vmatprep.mubr.msk.f32.mxu0 %vm7953_vm1, %v9380_v38 }
 0x3f7   : > { %7200 = vmatpush3.xpose.msk.msra.mxu1 %vm982_vm2, %v2820_v53  ;;  %7201 = vmatprep.mubr.msk.f32.mxu1 %vm7953_vm1, %v9380_v38 }
 0x3f8   : > { %7209 = vmatprep.subr.mxu1 %v9380_v38 }
 0x3fa   : > { %7202 = vmatmul.mubr.msk.f32.vlgmr.msra.gmra.mrb[38].mxu1 %vm982_vm2, %v2818_v57 }
 0x3fb   : > { %7211 = vmatprep.mubr.msk.f32.mxu1 %vm7953_vm1, %v9380_v38 }
 0x4a5   : > { %v1748_v58 = vpop.f32.mrb[16].mxu0 }
 0x4a6   : > { %2263 = vst.msk [vmem:[#allocation2] sm:$0xff] %vm982_vm2, %v1748_v58  ;;  %v7128_v59 = vpop.f32.mrb[17].mxu0 }
 0x4a9   : > { %v1821_v30 = vpop.f32.mrb[24].mxu1 }
 0x4aa   : > { %2264 = vst.msk [vmem:[#allocation2 + $0x8] sm:$0xff] %vm982_vm2, %v1821_v30  ;;  %v7133_v46 = vpop.f32.mrb[25].mxu1 }
 0x4ad   : > { %v1894_v45 = vpop.f32.mrb[18].mxu0 }
 0x4ae   : > { %2265 = vst.msk [vmem:[#allocation2 + $0x10] sm:$0xff] %vm982_vm2, %v1894_v45  ;;  %v7138_v36 = vpop.f32.mrb[19].mxu0 }
 0x4b1   : > { %v2040_v55 = vpop.f32.mrb[20].mxu0 }
 0x4b2   : > { %v1967_v56 = vpop.f32.mrb[26].mxu1  ;;  %2267 = vst.msk [vmem:[#allocation2 + $0x20] sm:$0xff] %vm982_vm2, %v2040_v55  ;;  %v7148_v21 = vpop.f32.mrb[21].mxu0 }
 0x4b3   : > { %2266 = vst.msk [vmem:[#allocation2 + $0x18] sm:$0xff] %vm982_vm2, %v1967_v56  ;;  %v7143_v22 = vpop.f32.mrb[27].mxu1 }
 0x4b5   : > { %v2186_v40 = vpop.f32.mrb[22].mxu0 }
 0x4b6   : > { %v2113_v33 = vpop.f32.mrb[28].mxu1  ;;  %2269 = vst.msk [vmem:[#allocation2 + $0x30] sm:$0xff] %vm982_vm2, %v2186_v40  ;;  %v7158_v41 = vpop.f32.mrb[23].mxu0 }
 0x4b7   : > { %2268 = vst.msk [vmem:[#allocation2 + $0x28] sm:$0xff] %vm982_vm2, %v2113_v33  ;;  %v7153_v44 = vpop.f32.mrb[29].mxu1 }
 0x4ba   : > { %v2259_v47 = vpop.f32.mrb[30].mxu1 }
 0x4bb   : > { %2270 = vst.msk [vmem:[#allocation2 + $0x38] sm:$0xff] %vm982_vm2, %v2259_v47  ;;  %v7163_v49 = vpop.f32.mrb[31].mxu1 }
 0x4bc   : > { %v2345_v39 = vpop.f32.mrb[24].mxu0 }
 0x4bd   : > { %v2346_v20 = vadd.f32 %v2345_v39, %v8496_v26  ;;  %v7168_v24 = vpop.f32.mrb[25].mxu0 }
 0x4bf   : > { %v2895_v29 = vsel %vm982_vm2, %v2346_v20, -inf }
 0x4c0   : > { %2896 = vmax.xlane.f32.xlu0 %v2895_v29  ;;  %v2501_v25 = vpop.f32.mrb[26].mxu0 }
 0x4c1   : > { %v2423_v27 = vpop.f32.mrb[32].mxu1  ;;  %v2502_v28 = vadd.f32 %v2501_v25, %v8506_v37  ;;  %v7178_v34 = vpop.f32.mrb[27].mxu0 }
 0x4c2   : > { %v2424_v43 = vadd.f32 %v2423_v27, %v8501_v32  ;;  %v7173_v35 = vpop.f32.mrb[33].mxu1 }
 0x4c3   : > { %v2901_v48 = vsel %vm982_vm2, %v2502_v28, -inf }
 0x4c4   : > { %2902 = vmax.xlane.f32.xlu0 %v2901_v48  ;;  %v2657_v50 = vpop.f32.mrb[28].mxu0  ;;  %v2898_v53 = vsel %vm982_vm2, %v2424_v43, -inf }
 0x4c5   : > { %v2658_v54 = vadd.f32 %v2657_v50, %v8509_v42  ;;  %2899 = vmax.xlane.f32.xlu1 %v2898_v53  ;;  %v2579_v57 = vpop.f32.mrb[34].mxu1  ;;  %v7188_v58 = vpop.f32.mrb[29].mxu0 }
 0x4c6   : > { %v2580_v59 = vadd.f32 %v2579_v57, %v8515_v51  ;;  %v7183_v30 = vpop.f32.mrb[35].mxu1 }
 0x4c7   : > { %v2907_v46 = vsel %vm982_vm2, %v2658_v54, -inf }
 0x4c8   : > { %v2813_v45 = vpop.f32.mrb[30].mxu0  ;;  %v2904_v36 = vsel %vm982_vm2, %v2580_v59, -inf }
 0x4c9   : > { %2908 = vmax.xlane.f32.xlu1 %v2907_v46  ;;  %2905 = vmax.xlane.f32.xlu0 %v2904_v36  ;;  %v2735_v55 = vpop.f32.mrb[36].mxu1  ;;  %v7198_v56 = vpop.f32.mrb[31].mxu0  ;;  %v8725_v49 = vadd.f32 %v2813_v45, %v8517_v52 }
 0x4ca   : > { %v2736_v21 = vadd.f32 %v2735_v55, %v8523_v23  ;;  %v7193_v22 = vpop.f32.mrb[37].mxu1 }
 0x4cb   : > { %v2913_v39 = vsel %vm982_vm2, %v8725_v49, -inf }
 0x4cc   : > { %v2910_v40 = vsel %vm982_vm2, %v2736_v21, -inf }
 0x4cd   : > { %2911 = vmax.xlane.f32.xlu0 %v2910_v40  ;;  %v2891_v33 = vpop.f32.mrb[38].mxu1 }
 0x4ce   : > { %v2892_v41 = vadd.f32 %v2891_v33, %v8527_v31  ;;  %v7203_v44 = vpop.f32.mrb[39].mxu1 }
 0x4d0   : > { %v2916_v47 = vsel %vm982_vm2, %v2892_v41, -inf }
 0x4d1   : > { %2917 = vmax.xlane.f32.xlu0 %v2916_v47 }
 0x4da   : > { %2984 = vrot.lane.b32.xlu1 %v8480_v13, %s7956_s8 }
 0x4e7   : > { %3061 = vrot.lane.b32.xlu0 %v8476_v12, %s7956_s8 }
 0x4eb   : > { %3292 = vrot.lane.b32.xlu0 %v8490_v17, %s7956_s8 }
 0x4ef   : > { %3446 = vrot.lane.b32.xlu0 %v8494_v19, %s7956_s8 }
 0x4f3   : > { %3642 = vrot.lane.b32.xlu0 %v8390_v61, %s7957_s30 }
 0x4f7   : > { %3640 = vrot.lane.b32.xlu0 %v8392_v62, %s7957_s30 }
 0x4fb   : > { %3798 = vrot.lane.b32.xlu0 %v8401_v0, %s7957_s30 }
 0x4fe   : > { %2914 = vmax.xlane.f32.xlu1 %v2913_v39 }
 0x50f   : > { %3138 = vrot.lane.b32.xlu1 %v8486_v15, %s7956_s8 }
 0x513   : > { %3215 = vrot.lane.b32.xlu1 %v8484_v14, %s7956_s8 }
 0x517   : > { %3369 = vrot.lane.b32.xlu1 %v8488_v16, %s7956_s8 }
 0x51b   : > { %3523 = vrot.lane.b32.xlu1 %v8492_v18, %s7956_s8 }
 0x51f   : > { %3720 = vrot.lane.b32.xlu1 %v8388_v60, %s7957_s30 }
 0x523   : > { %3718 = vrot.lane.b32.xlu1 %v8407_v1, %s7957_s30 }
 0x527   : > { %3876 = vrot.lane.b32.xlu1 %v8397_v63, %s7957_s30 }
 0x54d   : > { %v2897_v24 = vpop.xlane.xlu0 %2896 }
 0x54e   : > { %v2919_v29 = vsub.f32 %v2346_v20, %v2897_v24 }
 0x550   : > { %v2927_v25 = vmul.f32 1.442695, %v2919_v29 }
 0x551   : > { %v2903_v27 = vpop.xlane.xlu0 %2902 }
 0x552   : > { %7594 = vpow2.f32 %v2927_v25  ;;  %v2921_v34 = vsub.f32 %v2502_v28, %v2903_v27  ;;  %v2900_v35 = vpop.xlane.xlu1 %2899 }
 0x553   : > { %v2920_v48 = vsub.f32 %v2424_v43, %v2900_v35 }
 0x554   : > { %v2931_v50 = vmul.f32 1.442695, %v2921_v34 }
 0x555   : > { %v2929_v53 = vmul.f32 1.442695, %v2920_v48 }
 0x556   : > { %7596 = vpow2.f32 %v2931_v50  ;;  %v2909_v57 = vpop.xlane.xlu1 %2908  ;;  %v2906_v58 = vpop.xlane.xlu0 %2905 }
 0x557   : > { %7598 = vpow2.f32 %v2929_v53  ;;  %v2923_v30 = vsub.f32 %v2658_v54, %v2909_v57  ;;  %v2922_v46 = vsub.f32 %v2580_v59, %v2906_v58 }
 0x559   : > { %v2935_v45 = vmul.f32 1.442695, %v2923_v30  ;;  %v2933_v36 = vmul.f32 1.442695, %v2922_v46 }
 0x55a   : > { %v2985_v55 = vpop.permute.xlu1 %2984  ;;  %v2912_v56 = vpop.xlane.xlu0 %2911 }
 0x55b   : > { %7600 = vpow2.f32 %v2935_v45  ;;  %v2924_v20 = vsub.f32 %v2736_v21, %v2912_v56  ;;  %7205 = vmatpush3.msra.mxu0 %v2985_v55 }
 0x55c   : > { %v8745_v22 = vpop.eup %7594  ;;  %7602 = vpow2.f32 %v2933_v36  ;;  %7214 = vmatprep.subr.mxu0 %v9380_v38 }
 0x55d   : > { %v2937_v28 = vmul.f32 1.442695, %v2924_v20  ;;  %v2943_v43 = vsel %vm982_vm2, %v8745_v22, 0.0 }
 0x55e   : > { %v2918_v40 = vpop.xlane.xlu0 %2917  ;;  %2944 = vadd.xlane.f32.xlu1 %v2943_v43 }
 0x55f   : > { %7604 = vpow2.f32 %v2937_v28  ;;  %v2926_v54 = vsub.f32 %v2892_v41, %v2918_v40 }
 0x560   : > { %v8750_v59 = vpop.eup %7596 }
 0x561   : > { %v8752_v33 = vpop.eup %7598  ;;  %v2941_v44 = vmul.f32 1.442695, %v2926_v54  ;;  %v2949_v21 = vsel %vm982_vm2, %v8750_v59, 0.0 }
 0x562   : > { %v3062_v47 = vpop.permute.xlu0 %3061  ;;  %2950 = vadd.xlane.f32.xlu1 %v2949_v21  ;;  %v2946_v39 = vsel %vm982_vm2, %v8752_v33, 0.0 }
 0x563   : > { %7606 = vpow2.f32 %v2941_v44  ;;  %2947 = vadd.xlane.f32.xlu0 %v2946_v39  ;;  %7210 = vmatpush3.msra.mxu1 %v3062_v47 }
 0x564   : > { %7219 = vmatprep.subr.mxu1 %v9380_v38 }
 0x565   : > { %v8759_v24 = vpop.eup %7600 }
 0x566   : > { %v8761_v41 = vpop.eup %7602  ;;  %v2955_v29 = vsel %vm982_vm2, %v8759_v24, 0.0  ;;  %v3293_v46 = vpop.permute.xlu0 %3292 }
 0x567   : > { %2956 = vadd.xlane.f32.xlu1 %v2955_v29  ;;  %v2952_v25 = vsel %vm982_vm2, %v8761_v41, 0.0 }
 0x568   : > { %2953 = vadd.xlane.f32.xlu0 %v2952_v25 }
 0x569   : > { %v8767_v27 = vpop.eup %7604 }
 0x56a   : > { %v2958_v34 = vsel %vm982_vm2, %v8767_v27, 0.0  ;;  %v3447_v36 = vpop.permute.xlu0 %3446 }
 0x56c   : > { %2959 = vadd.xlane.f32.xlu0 %v2958_v34 }
 0x56d   : > { %v8771_v35 = vpop.eup %7606 }
 0x56e   : > { %v2964_v48 = vsel %vm982_vm2, %v8771_v35, 0.0  ;;  %v8824_v56 = vpop.permute.xlu0 %3642 }
 0x570   : > { %2965 = vadd.xlane.f32.xlu0 %v2964_v48 }
 0x572   : > { %v8826_v28 = vpop.permute.xlu0 %3640 }
 0x576   : > { %v8828_v54 = vpop.permute.xlu0 %3798 }
 0x586   : > { %3796 = vrot.lane.b32.xlu0 %v8416_v4, %s7957_s30 }
 0x58a   : > { %3954 = vrot.lane.b32.xlu0 %v8412_v3, %s7957_s30 }
 0x58b   : > { %v2915_v50 = vpop.xlane.xlu1 %2914 }
 0x58c   : > { %v2925_v53 = vsub.f32 %v8725_v49, %v2915_v50 }
 0x58e   : > { %v2939_v57 = vmul.f32 1.442695, %v2925_v53  ;;  %3952 = vrot.lane.b32.xlu0 %v8422_v5, %s7957_s30 }
 0x590   : > { %7608 = vpow2.f32 %v2939_v57 }
 0x592   : > { %4110 = vrot.lane.b32.xlu0 %v8430_v7, %s7957_s30 }
 0x596   : > { %4108 = vrot.lane.b32.xlu0 %v8440_v8, %s7957_s30 }
 0x59a   : > { %v8786_v58 = vpop.eup %7608  ;;  %4428 = vrot.lane.b32.xlu0 %v8476_v12, %s7957_s30 }
 0x59b   : > { %v2961_v30 = vsel %vm982_vm2, %v8786_v58, 0.0 }
 0x59c   : > { %2962 = vadd.xlane.f32.xlu1 %v2961_v30 }
 0x59e   : > { %4656 = vrot.lane.b32.xlu0 %v8490_v17, %s7957_s30 }
 0x5a2   : > { %4808 = vrot.lane.b32.xlu0 %v8494_v19, %s7957_s30 }
 0x5a6   : > { %5003 = vrot.lane.b32.xlu0 %v8390_v61, %s7958_s13  ;;  %v3139_v61 = vpop.permute.xlu1 %3138 }
 0x5aa   : > { %5001 = vrot.lane.b32.xlu0 %v8392_v62, %s7958_s13  ;;  %v3216_v62 = vpop.permute.xlu1 %3215 }
 0x5ad   : > { %3874 = vrot.lane.b32.xlu1 %v8442_v9, %s7957_s30 }
 0x5ae   : > { %v3370_v49 = vpop.permute.xlu1 %3369 }
 0x5b1   : > { %4032 = vrot.lane.b32.xlu1 %v8410_v2, %s7957_s30 }
 0x5b2   : > { %v3524_v45 = vpop.permute.xlu1 %3523 }
 0x5b5   : > { %4030 = vrot.lane.b32.xlu1 %v8458_v10, %s7957_s30 }
 0x5b6   : > { %v3721_v55 = vpop.permute.xlu1 %3720 }
 0x5b9   : > { %4188 = vrot.lane.b32.xlu1 %v8427_v6, %s7957_s30 }
 0x5ba   : > { %v3719_v20 = vpop.permute.xlu1 %3718 }
 0x5bd   : > { %4186 = vrot.lane.b32.xlu1 %v8469_v11, %s7957_s30 }
 0x5be   : > { %v3877_v43 = vpop.permute.xlu1 %3876 }
 0x5c1   : > { %4352 = vrot.lane.b32.xlu1 %v8480_v13, %s7957_s30 }
 0x5c5   : > { %4504 = vrot.lane.b32.xlu1 %v8486_v15, %s7957_s30 }
 0x5c9   : > { %4580 = vrot.lane.b32.xlu1 %v8484_v14, %s7957_s30 }
 0x5cd   : > { %4732 = vrot.lane.b32.xlu1 %v8488_v16, %s7957_s30 }
 0x5d1   : > { %4884 = vrot.lane.b32.xlu1 %v8492_v18, %s7957_s30 }
 0x5d5   : > { %5081 = vrot.lane.b32.xlu1 %v8388_v60, %s7958_s13 }
 0x5d9   : > { %5079 = vrot.lane.b32.xlu1 %v8407_v1, %s7958_s13 }
 0x5eb   : > { %v2945_v40 = vpop.xlane.xlu1 %2944 }
 0x5ec   : > { %7610 = vrcp.f32 %v2945_v40 }
 0x5ef   : > { %v2951_v44 = vpop.xlane.xlu1 %2950 }
 0x5f0   : > { %7612 = vrcp.f32 %v2951_v44  ;;  %v2948_v21 = vpop.xlane.xlu0 %2947 }
 0x5f1   : > { %7614 = vrcp.f32 %v2948_v21 }
 0x5f4   : > { %v2957_v60 = vpop.xlane.xlu1 %2956 }
 0x5f5   : > { %7616 = vrcp.f32 %v2957_v60  ;;  %v2954_v47 = vpop.xlane.xlu0 %2953 }
 0x5f6   : > { %v7611_v1 = vpop.eup %7610  ;;  %7618 = vrcp.f32 %v2954_v47 }
 0x5f7   : > { %v2975_v39 = vmul.f32 %v7611_v1, %v8745_v22 }
 0x5f9   : > { %v2960_v29 = vpop.xlane.xlu0 %2959  ;;  %7207 = vmatmul.mubr.msk.f32.vlgmr.msra.gmra.mrb[32].mxu0 %vm982_vm2, %v2975_v39 }
 0x5fa   : > { %v7613_v25 = vpop.eup %7612  ;;  %7620 = vrcp.f32 %v2960_v29  ;;  %7215 = vmatpush3.msra.mxu0 %v3139_v61  ;;  %7216 = vmatprep.mubr.msk.f32.mxu0 %vm7953_vm1, %v9380_v38 }
 0x5fb   : > { %v7615_v34 = vpop.eup %7614  ;;  %7224 = vmatprep.subr.mxu0 %v9380_v38  ;;  %v2977_v48 = vmul.f32 %v7613_v25, %v8750_v59 }
 0x5fc   : > { %v2976_v50 = vmul.f32 %v7615_v34, %v8752_v33 }
 0x5fd   : > { %v2966_v53 = vpop.xlane.xlu0 %2965  ;;  %7217 = vmatmul.mubr.msk.f32.vlgmr.msra.gmra.mrb[34].mxu0 %vm982_vm2, %v2977_v48 }
 0x5fe   : > { %7622 = vrcp.f32 %v2966_v53  ;;  %7212 = vmatmul.mubr.msk.f32.vlgmr.msra.gmra.mrb[40].mxu1 %vm982_vm2, %v2976_v50  ;;  %7225 = vmatpush3.msra.mxu0 %v3293_v46 }
 0x5ff   : > { %v7617_v22 = vpop.eup %7616  ;;  %7220 = vmatpush3.msra.mxu1 %v3216_v62  ;;  %7221 = vmatprep.mubr.msk.f32.mxu1 %vm7953_vm1, %v9380_v38 }
 0x600   : > { %v7619_v57 = vpop.eup %7618  ;;  %7226 = vmatprep.mubr.msk.f32.mxu0 %vm7953_vm1, %v9380_v38  ;;  %7229 = vmatprep.subr.mxu1 %v9380_v38  ;;  %v2979_v59 = vmul.f32 %v7617_v22, %v8759_v24 }
 0x601   : > { %7234 = vmatprep.subr.mxu0 %v9380_v38  ;;  %v2978_v33 = vmul.f32 %v7619_v57, %v8761_v41 }
 0x602   : > { %7227 = vmatmul.mubr.msk.f32.vlgmr.msra.gmra.mrb[36].mxu0 %vm982_vm2, %v2979_v59 }
 0x603   : > { %7222 = vmatmul.mubr.msk.f32.vlgmr.msra.gmra.mrb[42].mxu1 %vm982_vm2, %v2978_v33  ;;  %7235 = vmatpush3.msra.mxu0 %v3447_v36 }
 0x604   : > { %v7621_v30 = vpop.eup %7620  ;;  %7230 = vmatpush3.msra.mxu1 %v3370_v49  ;;  %7231 = vmatprep.mubr.msk.f32.mxu1 %vm7953_vm1, %v9380_v38 }
 0x605   : > { %7239 = vmatprep.subr.mxu1 %v9380_v38  ;;  %v2980_v61 = vmul.f32 %v7621_v30, %v8767_v27  ;;  %7236 = vmatprep.mubr.msk.f32.mxu0 %vm7953_vm1, %v9380_v38  ;;  %v3797_v27 = vpop.permute.xlu0 %3796 }
 0x606   : > { %7244 = vmatprep.subr.mxu0 %v9380_v38 }
 0x607   : > { %7232 = vmatmul.mubr.msk.f32.vlgmr.msra.gmra.mrb[44].mxu1 %vm982_vm2, %v2980_v61 }
 0x608   : > { %v7623_v24 = vpop.eup %7622  ;;  %7240 = vmatpush3.msra.mxu1 %v3524_v45  ;;  %7241 = vmatprep.mubr.msk.f32.mxu1 %vm7953_vm1, %v9380_v38 }
 0x609   : > { %v2982_v41 = vmul.f32 %v7623_v24, %v8771_v35  ;;  %7249 = vmatprep.subr.mxu1 %v9380_v38  ;;  %v3955_v35 = vpop.permute.xlu0 %3954 }
 0x60b   : > { %7242 = vmatmul.mubr.msk.f32.vlgmr.msra.gmra.mrb[46].mxu1 %vm982_vm2, %v2982_v41 }
 0x60c   : > { %7251 = vmatprep.mubr.msk.f32.mxu1 %vm7953_vm1, %v9380_v38 }
 0x60d   : > { %v3953_v49 = vpop.permute.xlu0 %3952 }
 0x60f   : > { %7250 = vmatpush3.xpose.msk.msra.mxu1 %vm982_vm2, %v3721_v55 }
 0x610   : > { %7259 = vmatprep.subr.mxu1 %v9380_v38 }
 0x611   : > { %v4111_v36 = vpop.permute.xlu0 %4110 }
 0x612   : > { %7252 = vmatmul.mubr.msk.f32.vlgmr.msra.gmra.mrb[48].mxu1 %vm982_vm2, %v3719_v20 }
 0x613   : > { %7260 = vmatpush3.xpose.msk.msra.mxu1 %vm982_vm2, %v3877_v43  ;;  %7261 = vmatprep.mubr.msk.f32.mxu1 %vm7953_vm1, %v9380_v38 }
 0x614   : > { %7269 = vmatprep.subr.mxu1 %v9380_v38 }
 0x615   : > { %v4109_v40 = vpop.permute.xlu0 %4108 }
 0x629   : > { %v2963_v62 = vpop.xlane.xlu1 %2962 }
 0x62a   : > { %7624 = vrcp.f32 %v2963_v62 }
 0x62d   : > { %v3875_v46 = vpop.permute.xlu1 %3874 }
 0x62e   : > { %7262 = vmatmul.mubr.msk.f32.vlgmr.msra.gmra.mrb[50].mxu1 %vm982_vm2, %v3875_v46 }
 0x62f   : > { %7271 = vmatprep.mubr.msk.f32.mxu1 %vm7953_vm1, %v9380_v38 }
 0x631   : > { %v4033_v45 = vpop.permute.xlu1 %4032 }
 0x632   : > { %7270 = vmatpush3.xpose.msk.msra.mxu1 %vm982_vm2, %v4033_v45 }
 0x633   : > { %7279 = vmatprep.subr.mxu1 %v9380_v38 }
 0x634   : > { %v7625_v55 = vpop.eup %7624 }
 0x635   : > { %v4031_v20 = vpop.permute.xlu1 %4030  ;;  %v2981_v43 = vmul.f32 %v7625_v55, %v8786_v58 }
 0x636   : > { %7272 = vmatmul.mubr.msk.f32.vlgmr.msra.gmra.mrb[52].mxu1 %vm982_vm2, %v4031_v20 }
 0x637   : > { %7237 = vmatmul.mubr.msk.f32.vlgmr.msra.gmra.mrb[38].mxu0 %vm982_vm2, %v2981_v43  ;;  %7281 = vmatprep.mubr.msk.f32.mxu1 %vm7953_vm1, %v9380_v38 }
 0x638   : > { %7245 = vmatpush3.xpose.msk.msra.mxu0 %vm982_vm2, %v8824_v56  ;;  %7246 = vmatprep.mubr.msk.f32.mxu0 %vm7953_vm1, %v9380_v38  ;;  %v4429_v56 = vpop.permute.xlu0 %4428 }
 0x639   : > { %v4189_v44 = vpop.permute.xlu1 %4188  ;;  %7254 = vmatprep.subr.mxu0 %v9380_v38 }
 0x63a   : > { %7280 = vmatpush3.xpose.msk.msra.mxu1 %vm982_vm2, %v4189_v44 }
 0x63b   : > { %7247 = vmatmul.mubr.msk.f32.vlgmr.msra.gmra.mrb[40].mxu0 %vm982_vm2, %v8826_v28  ;;  %7289 = vmatprep.subr.mxu1 %v9380_v38 }
 0x63c   : > { %7255 = vmatpush3.xpose.msk.msra.mxu0 %vm982_vm2, %v8828_v54  ;;  %7256 = vmatprep.mubr.msk.f32.mxu0 %vm7953_vm1, %v9380_v38 }
 0x63d   : > { %v4187_v58 = vpop.permute.xlu1 %4186  ;;  %7264 = vmatprep.subr.mxu0 %v9380_v38 }
 0x63e   : > { %7282 = vmatmul.mubr.msk.f32.vlgmr.msra.gmra.mrb[54].mxu1 %vm982_vm2, %v4187_v58 }
 0x63f   : > { %7290 = vmatpush3.msra.mxu1 %v4429_v56  ;;  %7257 = vmatmul.mubr.msk.f32.vlgmr.msra.gmra.mrb[42].mxu0 %vm982_vm2, %v3797_v27 }
 0x640   : > { %7265 = vmatpush3.xpose.msk.msra.mxu0 %vm982_vm2, %v3955_v35  ;;  %7266 = vmatprep.mubr.msk.f32.mxu0 %vm7953_vm1, %v9380_v38 }
 0x641   : > { %7274 = vmatprep.subr.mxu0 %v9380_v38  ;;  %7291 = vmatprep.mubr.msk.f32.mxu1 %vm7953_vm1, %v9380_v38  ;;  %v4353_v28 = vpop.permute.xlu1 %4352 }
 0x642   : > { %7299 = vmatprep.subr.mxu1 %v9380_v38 }
 0x643   : > { %7267 = vmatmul.mubr.msk.f32.vlgmr.msra.gmra.mrb[44].mxu0 %vm982_vm2, %v3953_v49 }
 0x644   : > { %7275 = vmatpush3.xpose.msk.msra.mxu0 %vm982_vm2, %v4111_v36  ;;  %7276 = vmatprep.mubr.msk.f32.mxu0 %vm7953_vm1, %v9380_v38 }
 0x645   : > { %7284 = vmatprep.subr.mxu0 %v9380_v38 }
 0x647   : > { %7277 = vmatmul.mubr.msk.f32.vlgmr.msra.gmra.mrb[46].mxu0 %vm982_vm2, %v4109_v40 }
 0x648   : > { %7285 = vmatpush3.msra.mxu0 %v4353_v28  ;;  %7286 = vmatprep.mubr.msk.f32.mxu0 %vm7953_vm1, %v9380_v38 }
 0x649   : > { %7294 = vmatprep.subr.mxu0 %v9380_v38 }
 0x6cc   : > { %v8913_v54 = vpop.f32.mrb[32].mxu0 }
 0x6cd   : > { %v7208_v21 = vpop.f32.mrb[33].mxu0 }
 0x6d0   : > { %v8915_v60 = vpop.f32.mrb[34].mxu0 }
 0x6d1   : > { %9421 = vst [vmem:[#allocation26_spill] sm:$0xff] %v8915_v60  ;;  %v8917_v47 = vpop.f32.mrb[40].mxu1  ;;  %v7218_v1 = vpop.f32.mrb[35].mxu0 }
 0x6d2   : > { %v7213_v39 = vpop.f32.mrb[41].mxu1 }
 0x6d5   : > { %v8919_v29 = vpop.f32.mrb[36].mxu0 }
 0x6d6   : > { %9422 = vst [vmem:[#allocation27_spill] sm:$0xff] %v8919_v29  ;;  %v8921_v25 = vpop.f32.mrb[42].mxu1  ;;  %v7228_v34 = vpop.f32.mrb[37].mxu0 }
 0x6d7   : > { %v7223_v48 = vpop.f32.mrb[43].mxu1 }
 0x6da   : > { %v8923_v50 = vpop.f32.mrb[44].mxu1 }
 0x6db   : > { %v7233_v53 = vpop.f32.mrb[45].mxu1 }
 0x6de   : > { %v8925_v22 = vpop.f32.mrb[46].mxu1 }
 0x6df   : > { %9423 = vst [vmem:[#allocation28_spill] sm:$0xff] %v8925_v22  ;;  %v7243_v57 = vpop.f32.mrb[47].mxu1 }
 0x6e5   : > { %v3792_v59 = vpop.f32.mrb[48].mxu1 }
 0x6e6   : > { %v3793_v33 = vadd.f32 %v3792_v59, %v8501_v32  ;;  %v7253_v30 = vpop.f32.mrb[49].mxu1 }
 0x6e8   : > { %v4267_v61 = vsel %vm982_vm2, %v3793_v33, -inf }
 0x6e9   : > { %4268 = vmax.xlane.f32.xlu1 %v4267_v61 }
 0x701   : > { %v3948_v24 = vpop.f32.mrb[50].mxu1 }
 0x702   : > { %v7263_v41 = vpop.f32.mrb[51].mxu1  ;;  %v3949_v56 = vadd.f32 %v3948_v24, %v8515_v51 }
 0x704   : > { %v4273_v53 = vsel %vm982_vm2, %v3949_v56, -inf }
 0x709   : > { %v4104_v27 = vpop.f32.mrb[52].mxu1 }
 0x70a   : > { %v8929_v35 = vpop.f32.mrb[38].mxu0  ;;  %v7273_v62 = vpop.f32.mrb[53].mxu1  ;;  %v4105_v34 = vadd.f32 %v4104_v27, %v8523_v23 }
 0x70b   : > { %9424 = vst [vmem:[#allocation29_spill] sm:$0xff] %v8929_v35  ;;  %v7238_v49 = vpop.f32.mrb[39].mxu0  ;;  %v8955_v62 = vpop.permute.xlu1 %4504 }
 0x70c   : > { %v4279_v41 = vsel %vm982_vm2, %v4105_v34, -inf }
 0x70e   : > { %v3714_v46 = vpop.f32.mrb[40].mxu0 }
 0x70f   : > { %v3715_v45 = vadd.f32 %v3714_v46, %v8496_v26  ;;  %v7248_v36 = vpop.f32.mrb[41].mxu0  ;;  %v8957_v49 = vpop.permute.xlu1 %4580 }
 0x711   : > { %v4260_v55 = vpop.f32.mrb[54].mxu1  ;;  %v4264_v20 = vsel %vm982_vm2, %v3715_v45, -inf }
 0x712   : > { %4265 = vmax.xlane.f32.xlu0 %v4264_v20  ;;  %v3870_v43 = vpop.f32.mrb[42].mxu0  ;;  %v7283_v40 = vpop.f32.mrb[55].mxu1  ;;  %v8944_v61 = vadd.f32 %v4260_v55, %v8527_v31 }
 0x713   : > { %v3871_v44 = vadd.f32 %v3870_v43, %v8506_v37  ;;  %v7258_v58 = vpop.f32.mrb[43].mxu0  ;;  %v8959_v46 = vpop.permute.xlu1 %4732 }
 0x714   : > { %v4285_v27 = vsel %vm982_vm2, %v8944_v61, -inf }
 0x715   : > { %v4270_v28 = vsel %vm982_vm2, %v3871_v44, -inf }
 0x716   : > { %4271 = vmax.xlane.f32.xlu0 %v4270_v28  ;;  %v4026_v21 = vpop.f32.mrb[44].mxu0  ;;  %v8971_v28 = vpop.permute.xlu0 %4656 }
 0x717   : > { %v4027_v1 = vadd.f32 %v4026_v21, %v8509_v42  ;;  %v7268_v39 = vpop.f32.mrb[45].mxu0  ;;  %v8961_v36 = vpop.permute.xlu1 %4884 }
 0x719   : > { %v4276_v48 = vsel %vm982_vm2, %v4027_v1, -inf }
 0x71a   : > { %v4182_v57 = vpop.f32.mrb[46].mxu0  ;;  %4277 = vmax.xlane.f32.xlu1 %v4276_v48  ;;  %4274 = vmax.xlane.f32.xlu0 %v4273_v53  ;;  %v8973_v21 = vpop.permute.xlu0 %4808 }
 0x71b   : > { %v8941_v59 = vadd.f32 %v4182_v57, %v8517_v52  ;;  %v7278_v30 = vpop.f32.mrb[47].mxu0  ;;  %v8963_v55 = vpop.permute.xlu1 %5081 }
 0x71d   : > { %v4282_v24 = vsel %vm982_vm2, %v8941_v59, -inf }
 0x71e   : > { %4283 = vmax.xlane.f32.xlu1 %v4282_v24  ;;  %4280 = vmax.xlane.f32.xlu0 %v4279_v41  ;;  %v8975_v39 = vpop.permute.xlu0 %5003 }
 0x71f   : > { %v8965_v20 = vpop.permute.xlu1 %5079 }
 0x722   : > { %4286 = vmax.xlane.f32.xlu0 %v4285_v27  ;;  %v8977_v48 = vpop.permute.xlu0 %5001 }
 0x72f   : > { %5237 = vrot.lane.b32.xlu1 %v8397_v63, %s7958_s13 }
 0x738   : > { %5159 = vrot.lane.b32.xlu0 %v8401_v0, %s7958_s13 }
 0x776   : > { %v4269_v43 = vpop.xlane.xlu1 %4268 }
 0x777   : > { %v4289_v40 = vsub.f32 %v3793_v33, %v4269_v43 }
 0x779   : > { %v4298_v58 = vmul.f32 1.442695, %v4289_v40 }
 0x77b   : > { %7626 = vpow2.f32 %v4298_v58 }
 0x785   : > { %v8967_v63 = vpop.eup %7626 }
 0x786   : > { %v4315_v0 = vsel %vm982_vm2, %v8967_v63, 0.0 }
 0x787   : > { %4316 = vadd.xlane.f32.xlu0 %v4315_v0 }
 0x79f   : > { %v4266_v53 = vpop.xlane.xlu0 %4265 }
 0x7a0   : > { %v4288_v57 = vsub.f32 %v3715_v45, %v4266_v53 }
 0x7a2   : > { %v4296_v30 = vmul.f32 1.442695, %v4288_v57 }
 0x7a3   : > { %v4272_v33 = vpop.xlane.xlu0 %4271 }
 0x7a4   : > { %7628 = vpow2.f32 %v4296_v30  ;;  %v4290_v24 = vsub.f32 %v3871_v44, %v4272_v33 }
 0x7a6   : > { %v4300_v41 = vmul.f32 1.442695, %v4290_v24 }
 0x7a7   : > { %v4278_v27 = vpop.xlane.xlu1 %4277  ;;  %v4275_v43 = vpop.xlane.xlu0 %4274 }
 0x7a8   : > { %7630 = vpow2.f32 %v4300_v41  ;;  %v4292_v40 = vsub.f32 %v4027_v1, %v4278_v27  ;;  %v4291_v58 = vsub.f32 %v3949_v56, %v4275_v43 }
 0x7aa   : > { %v4304_v0 = vmul.f32 1.442695, %v4292_v40  ;;  %v4302_v38 = vmul.f32 1.442695, %v4291_v58 }
 0x7ab   : > { %v4281_v35 = vpop.xlane.xlu0 %4280 }
 0x7ac   : > { %7632 = vpow2.f32 %v4304_v0  ;;  %v4293_v29 = vsub.f32 %v4105_v34, %v4281_v35  ;;  %v4284_v35 = vpop.xlane.xlu1 %4283 }
 0x7ad   : > { %7634 = vpow2.f32 %v4302_v38  ;;  %v4294_v34 = vsub.f32 %v8941_v59, %v4284_v35 }
 0x7ae   : > { %v7629_v22 = vpop.eup %7628  ;;  %v4306_v60 = vmul.f32 1.442695, %v4293_v29 }
 0x7af   : > { %v4312_v45 = vsel %vm982_vm2, %v7629_v22, 0.0  ;;  %v4287_v30 = vpop.xlane.xlu0 %4286  ;;  %v4308_v33 = vmul.f32 1.442695, %v4294_v34 }
 0x7b0   : > { %4313 = vadd.xlane.f32.xlu1 %v4312_v45  ;;  %7636 = vpow2.f32 %v4306_v60  ;;  %v4295_v24 = vsub.f32 %v8944_v61, %v4287_v30 }
 0x7b1   : > { %7638 = vpow2.f32 %v4308_v33 }
 0x7b2   : > { %v7631_v53 = vpop.eup %7630  ;;  %v4310_v41 = vmul.f32 1.442695, %v4295_v24 }
 0x7b3   : > { %v4318_v44 = vsel %vm982_vm2, %v7631_v53, 0.0  ;;  %v9019_v59 = vpop.permute.xlu0 %5159 }
 0x7b4   : > { %4319 = vadd.xlane.f32.xlu1 %v4318_v44  ;;  %7640 = vpow2.f32 %v4310_v41 }
 0x7b6   : > { %v8981_v57 = vpop.eup %7632 }
 0x7b7   : > { %v8983_v1 = vpop.eup %7634  ;;  %v4324_v56 = vsel %vm982_vm2, %v8981_v57, 0.0 }
 0x7b8   : > { %4325 = vadd.xlane.f32.xlu1 %v4324_v56  ;;  %v4321_v38 = vsel %vm982_vm2, %v8983_v1, 0.0 }
 0x7b9   : > { %4322 = vadd.xlane.f32.xlu0 %v4321_v38 }
 0x7ba   : > { %v8989_v29 = vpop.eup %7636 }
 0x7bb   : > { %v4327_v60 = vsel %vm982_vm2, %v8989_v29, 0.0  ;;  %v8999_v27 = vpop.eup %7638 }
 0x7bc   : > { %v4330_v43 = vsel %vm982_vm2, %v8999_v27, 0.0 }
 0x7bd   : > { %4328 = vadd.xlane.f32.xlu0 %v4327_v60 }
 0x7c9   : > { %5235 = vrot.lane.b32.xlu1 %v8442_v9, %s7958_s13  ;;  %v9003_v9 = vpop.eup %7640 }
 0x7d3   : > { %5157 = vrot.lane.b32.xlu0 %v8416_v4, %s7958_s13  ;;  %v4333_v4 = vsel %vm982_vm2, %v9003_v9, 0.0 }
 0x7ed   : > { %4331 = vadd.xlane.f32.xlu1 %v4330_v43 }
 0x7f2   : > { %4334 = vadd.xlane.f32.xlu0 %v4333_v4 }
 0x7fe   : > { %5393 = vrot.lane.b32.xlu1 %v8410_v2, %s7958_s13 }
 0x802   : > { %5391 = vrot.lane.b32.xlu1 %v8458_v10, %s7958_s13 }
 0x806   : > { %5549 = vrot.lane.b32.xlu1 %v8427_v6, %s7958_s13 }
 0x808   : > { %5315 = vrot.lane.b32.xlu0 %v8412_v3, %s7958_s13  ;;  %v9425_v3 = vmov 0.0  }
 0x80a   : > { %5547 = vrot.lane.b32.xlu1 %v8469_v11, %s7958_s13 }
 0x80c   : > { %5313 = vrot.lane.b32.xlu0 %v8422_v5, %s7958_s13  ;;  %v9031_v5 = vpop.permute.xlu1 %5237 }
 0x810   : > { %5471 = vrot.lane.b32.xlu0 %v8430_v7, %s7958_s13 }
 0x814   : > { %v4317_v2 = vpop.xlane.xlu0 %4316  ;;  %5469 = vrot.lane.b32.xlu0 %v8440_v8, %s7958_s13 }
 0x815   : > { %7642 = vrcp.f32 %v4317_v2 }
 0x81f   : > { %v7643_v6 = vpop.eup %7642 }
 0x820   : > { %v4345_v10 = vmul.f32 %v7643_v6, %v8967_v63 }
 0x822   : > { %7292 = vmatmul.mubr.msk.f32.vlgmr.msra.gmra.mrb[56].mxu1 %vm982_vm2, %v4345_v10 }
 0x823   : > { %7300 = vmatpush3.msra.mxu1 %v8957_v49  ;;  %7301 = vmatprep.mubr.msk.f32.mxu1 %vm7953_vm1, %v9425_v3 }
 0x824   : > { %7309 = vmatprep.subr.mxu1 %v9425_v3 }
 0x83d   : > { %v4314_v7 = vpop.xlane.xlu1 %4313 }
 0x83e   : > { %7644 = vrcp.f32 %v4314_v7 }
 0x841   : > { %v4320_v11 = vpop.xlane.xlu1 %4319 }
 0x842   : > { %7646 = vrcp.f32 %v4320_v11 }
 0x845   : > { %v4326_v8 = vpop.xlane.xlu1 %4325 }
 0x846   : > { %7648 = vrcp.f32 %v4326_v8  ;;  %v4323_v61 = vpop.xlane.xlu0 %4322 }
 0x847   : > { %7650 = vrcp.f32 %v4323_v61 }
 0x848   : > { %v7645_v63 = vpop.eup %7644 }
 0x849   : > { %v4344_v40 = vmul.f32 %v7645_v63, %v7629_v22 }
 0x84a   : > { %v4329_v58 = vpop.xlane.xlu0 %4328 }
 0x84b   : > { %7652 = vrcp.f32 %v4329_v58  ;;  %7287 = vmatmul.mubr.msk.f32.vlgmr.msra.gmra.mrb[48].mxu0 %vm982_vm2, %v4344_v40 }
 0x84c   : > { %v7647_v49 = vpop.eup %7646  ;;  %7295 = vmatpush3.msra.mxu0 %v8955_v62  ;;  %7296 = vmatprep.mubr.msk.f32.mxu0 %vm7953_vm1, %v9425_v3 }
 0x84d   : > { %v4346_v0 = vmul.f32 %v7647_v49, %v7631_v53  ;;  %7304 = vmatprep.subr.mxu0 %v9425_v3 }
 0x84f   : > { %7297 = vmatmul.mubr.msk.f32.vlgmr.msra.gmra.mrb[50].mxu0 %vm982_vm2, %v4346_v0 }
 0x850   : > { %v7649_v45 = vpop.eup %7648  ;;  %7305 = vmatpush3.msra.mxu0 %v8971_v28  ;;  %7306 = vmatprep.mubr.msk.f32.mxu0 %vm7953_vm1, %v9425_v3 }
 0x851   : > { %v7651_v22 = vpop.eup %7650  ;;  %v4348_v44 = vmul.f32 %v7649_v45, %v8981_v57  ;;  %7314 = vmatprep.subr.mxu0 %v9425_v3  ;;  %v5158_v57 = vpop.permute.xlu0 %5157 }
 0x852   : > { %v4347_v62 = vmul.f32 %v7651_v22, %v8983_v1 }
 0x853   : > { %7307 = vmatmul.mubr.msk.f32.vlgmr.msra.gmra.mrb[52].mxu0 %vm982_vm2, %v4348_v44 }
 0x854   : > { %7302 = vmatmul.mubr.msk.f32.vlgmr.msra.gmra.mrb[58].mxu1 %vm982_vm2, %v4347_v62  ;;  %7315 = vmatpush3.msra.mxu0 %v8973_v21 }
 0x855   : > { %v7653_v53 = vpop.eup %7652  ;;  %7310 = vmatpush3.msra.mxu1 %v8959_v46  ;;  %7311 = vmatprep.mubr.msk.f32.mxu1 %vm7953_vm1, %v9425_v3  ;;  %v5236_v46 = vpop.permute.xlu1 %5235 }
 0x856   : > { %v4349_v28 = vmul.f32 %v7653_v53, %v8989_v29  ;;  %7319 = vmatprep.subr.mxu1 %v9425_v3  ;;  %7316 = vmatprep.mubr.msk.f32.mxu0 %vm7953_vm1, %v9425_v3 }
 0x857   : > { %7324 = vmatprep.subr.mxu0 %v9425_v3 }
 0x858   : > { %7312 = vmatmul.mubr.msk.f32.vlgmr.msra.gmra.mrb[60].mxu1 %vm982_vm2, %v4349_v28 }
 0x859   : > { %7320 = vmatpush3.msra.mxu1 %v8961_v36  ;;  %7321 = vmatprep.mubr.msk.f32.mxu1 %vm7953_vm1, %v9425_v3 }
 0x85a   : > { %7329 = vmatprep.subr.mxu1 %v9425_v3 }
 0x87a   : > { %v4332_v21 = vpop.xlane.xlu1 %4331 }
 0x87b   : > { %7654 = vrcp.f32 %v4332_v21 }
 0x87e   : > { %v5394_v60 = vpop.permute.xlu1 %5393 }
 0x87f   : > { %v4335_v1 = vpop.xlane.xlu0 %4334 }
 0x880   : > { %7656 = vrcp.f32 %v4335_v1 }
 0x883   : > { %v5316_v38 = vpop.permute.xlu0 %5315 }
 0x885   : > { %v7655_v56 = vpop.eup %7654 }
 0x886   : > { %v4350_v29 = vmul.f32 %v7655_v56, %v8999_v27 }
 0x887   : > { %v5314_v34 = vpop.permute.xlu0 %5313 }
 0x888   : > { %7317 = vmatmul.mubr.msk.f32.vlgmr.msra.gmra.mrb[54].mxu0 %vm982_vm2, %v4350_v29 }
 0x889   : > { %7325 = vmatpush3.xpose.msk.msra.mxu0 %vm982_vm2, %v8975_v39  ;;  %7326 = vmatprep.mubr.msk.f32.mxu0 %vm7953_vm1, %v9425_v3  ;;  %v5392_v39 = vpop.permute.xlu1 %5391 }
 0x88a   : > { %v7657_v36 = vpop.eup %7656  ;;  %7334 = vmatprep.subr.mxu0 %v9425_v3 }
 0x88b   : > { %v4351_v35 = vmul.f32 %v7657_v36, %v9003_v9 }
 0x88c   : > { %7327 = vmatmul.mubr.msk.f32.vlgmr.msra.gmra.mrb[56].mxu0 %vm982_vm2, %v8977_v48  ;;  %v5472_v48 = vpop.permute.xlu0 %5471 }
 0x88d   : > { %7322 = vmatmul.mubr.msk.f32.vlgmr.msra.gmra.mrb[62].mxu1 %vm982_vm2, %v4351_v35  ;;  %7335 = vmatpush3.xpose.msk.msra.mxu0 %vm982_vm2, %v9019_v59 }
 0x88e   : > { %7330 = vmatpush3.xpose.msk.msra.mxu1 %vm982_vm2, %v8963_v55  ;;  %7331 = vmatprep.mubr.msk.f32.mxu1 %vm7953_vm1, %v9425_v3  ;;  %v5550_v55 = vpop.permute.xlu1 %5549 }
 0x88f   : > { %7336 = vmatprep.mubr.msk.f32.mxu0 %vm7953_vm1, %v9425_v3  ;;  %7339 = vmatprep.subr.mxu1 %v9425_v3 }
 0x890   : > { %7344 = vmatprep.subr.mxu0 %v9425_v3  ;;  %7337 = vmatmul.mubr.msk.f32.vlgmr.msra.gmra.mrb[58].mxu0 %vm982_vm2, %v5158_v57 }
 0x891   : > { %7332 = vmatmul.mubr.msk.f32.vlgmr.msra.gmra.mrb[64].mxu1 %vm982_vm2, %v8965_v20  ;;  %7345 = vmatpush3.xpose.msk.msra.mxu0 %vm982_vm2, %v5316_v38  ;;  %v5470_v20 = vpop.permute.xlu0 %5469 }
 0x892   : > { %7340 = vmatpush3.xpose.msk.msra.mxu1 %vm982_vm2, %v9031_v5  ;;  %7341 = vmatprep.mubr.msk.f32.mxu1 %vm7953_vm1, %v9425_v3  ;;  %v5548_v30 = vpop.permute.xlu1 %5547 }
 0x893   : > { %7346 = vmatprep.mubr.msk.f32.mxu0 %vm7953_vm1, %v9425_v3  ;;  %7349 = vmatprep.subr.mxu1 %v9425_v3 }
 0x894   : > { %7354 = vmatprep.subr.mxu0 %v9425_v3  ;;  %7347 = vmatmul.mubr.msk.f32.vlgmr.msra.gmra.mrb[60].mxu0 %vm982_vm2, %v5314_v34 }
 0x895   : > { %7342 = vmatmul.mubr.msk.f32.vlgmr.msra.gmra.mrb[66].mxu1 %vm982_vm2, %v5236_v46  ;;  %7355 = vmatpush3.xpose.msk.msra.mxu0 %vm982_vm2, %v5472_v48 }
 0x896   : > { %7350 = vmatpush3.xpose.msk.msra.mxu1 %vm982_vm2, %v5394_v60  ;;  %7351 = vmatprep.mubr.msk.f32.mxu1 %vm7953_vm1, %v9425_v3 }
 0x897   : > { %7356 = vmatprep.mubr.msk.f32.mxu0 %vm7953_vm1, %v9425_v3  ;;  %7359 = vmatprep.subr.mxu1 %v9425_v3 }
 0x898   : > { %7357 = vmatmul.mubr.msk.f32.vlgmr.msra.gmra.mrb[62].mxu0 %vm982_vm2, %v5470_v20  ;;  %7364 = vmatprep.subr.mxu0 %v9425_v3 }
 0x899   : > { %7352 = vmatmul.mubr.msk.f32.vlgmr.msra.gmra.mrb[68].mxu1 %vm982_vm2, %v5392_v39  ;;  %7366 = vmatprep.mubr.msk.f32.mxu0 %vm7953_vm1, %v9425_v3 }
 0x89a   : > { %7360 = vmatpush3.xpose.msk.msra.mxu1 %vm982_vm2, %v5550_v55  ;;  %7361 = vmatprep.mubr.msk.f32.mxu1 %vm7953_vm1, %v9425_v3 }
 0x89b   : > { %7369 = vmatprep.subr.mxu1 %v9425_v3 }
 0x89d   : > { %7362 = vmatmul.mubr.msk.f32.vlgmr.msra.gmra.mrb[70].mxu1 %vm982_vm2, %v5548_v30 }
 0x89e   : > { %7371 = vmatprep.mubr.msk.f32.mxu1 %vm7953_vm1, %v9425_v3 }
 0x8f5   : > { %v9115_v33 = vpop.f32.mrb[56].mxu1 }
 0x8f6   : > { %v7293_v24 = vpop.f32.mrb[57].mxu1 }
 0x91e   : > { %v9117_v41 = vpop.f32.mrb[48].mxu0 }
 0x91f   : > { %v7288_v27 = vpop.f32.mrb[49].mxu0 }
 0x922   : > { %v9119_v43 = vpop.f32.mrb[50].mxu0 }
 0x923   : > { %v7298_v9 = vpop.f32.mrb[51].mxu0 }
 0x926   : > { %v9121_v4 = vpop.f32.mrb[52].mxu0 }
 0x927   : > { %v9123_v59 = vpop.f32.mrb[58].mxu1  ;;  %v7308_v2 = vpop.f32.mrb[53].mxu0 }
 0x928   : > { %v7303_v6 = vpop.f32.mrb[59].mxu1 }
 0x92b   : > { %v9125_v10 = vpop.f32.mrb[60].mxu1 }
 0x92c   : > { %v7313_v5 = vpop.f32.mrb[61].mxu1 }
 0x95b   : > { %v9127_v7 = vpop.f32.mrb[54].mxu0 }
 0x95c   : > { %v7318_v11 = vpop.f32.mrb[55].mxu0 }
 0x95f   : > { %v5075_v8 = vpop.f32.mrb[56].mxu0 }
 0x960   : > { %v9129_v61 = vpop.f32.mrb[62].mxu1  ;;  %v5076_v63 = vadd.f32 %v5075_v8, %v8496_v26  ;;  %v7328_v40 = vpop.f32.mrb[57].mxu0 }
 0x961   : > { %v7323_v58 = vpop.f32.mrb[63].mxu1 }
 0x962   : > { %v5625_v49 = vsel %vm982_vm2, %v5076_v63, -inf }
 0x963   : > { %5626 = vmax.xlane.f32.xlu0 %v5625_v49  ;;  %v5231_v0 = vpop.f32.mrb[58].mxu0 }
 0x964   : > { %v5153_v45 = vpop.f32.mrb[64].mxu1  ;;  %v5232_v22 = vadd.f32 %v5231_v0, %v8506_v37  ;;  %v7338_v44 = vpop.f32.mrb[59].mxu0 }
 0x965   : > { %v5154_v62 = vadd.f32 %v5153_v45, %v8501_v32  ;;  %v7333_v53 = vpop.f32.mrb[65].mxu1 }
 0x966   : > { %v5631_v28 = vsel %vm982_vm2, %v5232_v22, -inf }
 0x967   : > { %5632 = vmax.xlane.f32.xlu0 %v5631_v28  ;;  %v5387_v46 = vpop.f32.mrb[60].mxu0  ;;  %v5628_v21 = vsel %vm982_vm2, %v5154_v62, -inf }
 0x968   : > { %v5388_v26 = vadd.f32 %v5387_v46, %v8509_v42  ;;  %5629 = vmax.xlane.f32.xlu1 %v5628_v21  ;;  %v5309_v57 = vpop.f32.mrb[66].mxu1  ;;  %v7348_v1 = vpop.f32.mrb[61].mxu0 }
 0x969   : > { %v5310_v56 = vadd.f32 %v5309_v57, %v8515_v51  ;;  %v7343_v38 = vpop.f32.mrb[67].mxu1 }
 0x96a   : > { %v5637_v37 = vsel %vm982_vm2, %v5388_v26, -inf }
 0x96b   : > { %v5543_v29 = vpop.f32.mrb[62].mxu0  ;;  %v5634_v32 = vsel %vm982_vm2, %v5310_v56, -inf }
 0x96c   : > { %v5544_v36 = vadd.f32 %v5543_v29, %v8517_v52  ;;  %5638 = vmax.xlane.f32.xlu1 %v5637_v37  ;;  %5635 = vmax.xlane.f32.xlu0 %v5634_v32  ;;  %v5465_v60 = vpop.f32.mrb[68].mxu1  ;;  %v7358_v35 = vpop.f32.mrb[63].mxu0 }
 0x96d   : > { %v5466_v34 = vadd.f32 %v5465_v60, %v8523_v23  ;;  %v7353_v42 = vpop.f32.mrb[69].mxu1 }
 0x96e   : > { %v5643_v39 = vsel %vm982_vm2, %v5544_v36, -inf }
 0x96f   : > { %v5640_v48 = vsel %vm982_vm2, %v5466_v34, -inf }
 0x970   : > { %5644 = vmax.xlane.f32.xlu1 %v5643_v39  ;;  %5641 = vmax.xlane.f32.xlu0 %v5640_v48  ;;  %v5621_v51 = vpop.f32.mrb[70].mxu1 }
 0x971   : > { %v5622_v55 = vadd.f32 %v5621_v51, %v8527_v31  ;;  %v7363_v20 = vpop.f32.mrb[71].mxu1 }
 0x973   : > { %v5646_v30 = vsel %vm982_vm2, %v5622_v55, -inf }
 0x974   : > { %5647 = vmax.xlane.f32.xlu0 %v5646_v30 }
 0x981   : > { %5713 = vrot.lane.b32.xlu1 %v8480_v13, %s7958_s13 }
 0x985   : > { %5865 = vrot.lane.b32.xlu1 %v8486_v15, %s7958_s13 }
 0x989   : > { %5941 = vrot.lane.b32.xlu1 %v8484_v14, %s7958_s13 }
 0x98a   : > { %5789 = vrot.lane.b32.xlu0 %v8476_v12, %s7958_s13 }
 0x98d   : > { %6093 = vrot.lane.b32.xlu1 %v8488_v16, %s7958_s13 }
 0x98e   : > { %6017 = vrot.lane.b32.xlu0 %v8490_v17, %s7958_s13 }
 0x9f0   : > { %v5627_v52 = vpop.xlane.xlu0 %5626 }
 0x9f1   : > { %v5649_v23 = vsub.f32 %v5076_v63, %v5627_v52 }
 0x9f3   : > { %v5657_v31 = vmul.f32 1.442695, %v5649_v23 }
 0x9f4   : > { %v5633_v24 = vpop.xlane.xlu0 %5632 }
 0x9f5   : > { %7658 = vpow2.f32 %v5657_v31  ;;  %v5651_v13 = vsub.f32 %v5232_v22, %v5633_v24  ;;  %v5630_v27 = vpop.xlane.xlu1 %5629 }
 0x9f6   : > { %v5650_v15 = vsub.f32 %v5154_v62, %v5630_v27 }
 0x9f7   : > { %v5661_v9 = vmul.f32 1.442695, %v5651_v13 }
 0x9f8   : > { %v5659_v2 = vmul.f32 1.442695, %v5650_v15 }
 0x9f9   : > { %7660 = vpow2.f32 %v5661_v9  ;;  %v5639_v14 = vpop.xlane.xlu1 %5638  ;;  %v5636_v6 = vpop.xlane.xlu0 %5635 }
 0x9fa   : > { %7662 = vpow2.f32 %v5659_v2  ;;  %v5653_v12 = vsub.f32 %v5388_v26, %v5639_v14  ;;  %v5652_v5 = vsub.f32 %v5310_v56, %v5636_v6 }
 0x9fc   : > { %v5665_v16 = vmul.f32 1.442695, %v5653_v12  ;;  %v5663_v11 = vmul.f32 1.442695, %v5652_v5 }
 0x9fd   : > { %v5645_v8 = vpop.xlane.xlu1 %5644  ;;  %v5642_v17 = vpop.xlane.xlu0 %5641 }
 0x9fe   : > { %7664 = vpow2.f32 %v5665_v16  ;;  %v5655_v63 = vsub.f32 %v5544_v36, %v5645_v8  ;;  %v5654_v40 = vsub.f32 %v5466_v34, %v5642_v17 }
 0x9ff   : > { %v9159_v58 = vpop.eup %7658  ;;  %7666 = vpow2.f32 %v5663_v11 }
 0xa00   : > { %v5669_v49 = vmul.f32 1.442695, %v5655_v63  ;;  %v5667_v0 = vmul.f32 1.442695, %v5654_v40  ;;  %v5673_v45 = vsel %vm982_vm2, %v9159_v58, 0.0 }
 0xa01   : > { %v5714_v22 = vpop.permute.xlu1 %5713  ;;  %v5648_v44 = vpop.xlane.xlu0 %5647  ;;  %5674 = vadd.xlane.f32.xlu1 %v5673_v45 }
 0xa02   : > { %7668 = vpow2.f32 %v5669_v49  ;;  %v5656_v62 = vsub.f32 %v5622_v55, %v5648_v44  ;;  %7365 = vmatpush3.msra.mxu0 %v5714_v22 }
 0xa03   : > { %v9163_v53 = vpop.eup %7660  ;;  %7670 = vpow2.f32 %v5667_v0  ;;  %7374 = vmatprep.subr.mxu0 %v9425_v3 }
 0xa04   : > { %v9166_v28 = vpop.eup %7662  ;;  %v5671_v46 = vmul.f32 1.442695, %v5656_v62  ;;  %v5679_v21 = vsel %vm982_vm2, %v9163_v53, 0.0 }
 0xa05   : > { %v5790_v26 = vpop.permute.xlu0 %5789  ;;  %5680 = vadd.xlane.f32.xlu1 %v5679_v21  ;;  %v5676_v57 = vsel %vm982_vm2, %v9166_v28, 0.0  ;;  %v6371_v21 = vld [vmem:[#allocation12 + $0x8] sm:$0xff] }
 0xa06   : > { %7672 = vpow2.f32 %v5671_v46  ;;  %5677 = vadd.xlane.f32.xlu0 %v5676_v57  ;;  %7370 = vmatpush3.msra.mxu1 %v5790_v26  ;;  %v6370_v46 = vld [vmem:[#allocation12] sm:$0xff]  ;;  %v6372_v57 = vld [vmem:[#allocation12 + $0x10] sm:$0xff] }
 0xa07   : > { %7379 = vmatprep.subr.mxu1 %v9425_v3  ;;  %v7448_v26 = vpack.c.bf16 %v6371_v21, %v6370_v46 }
 0xa08   : > { %v9173_v1 = vpop.eup %7664 }
 0xa09   : > { %v9175_v56 = vpop.eup %7666  ;;  %v5685_v38 = vsel %vm982_vm2, %v9173_v1, 0.0 }
 0xa0a   : > { %5686 = vadd.xlane.f32.xlu1 %v5685_v38  ;;  %v5682_v37 = vsel %vm982_vm2, %v9175_v56, 0.0 }
 0xa0b   : > { %5683 = vadd.xlane.f32.xlu0 %v5682_v37 }
 0xa0c   : > { %v9181_v29 = vpop.eup %7668 }
 0xa0d   : > { %v9183_v32 = vpop.eup %7670  ;;  %v5691_v36 = vsel %vm982_vm2, %v9181_v29, 0.0 }
 0xa0e   : > { %5692 = vadd.xlane.f32.xlu1 %v5691_v36  ;;  %v5688_v60 = vsel %vm982_vm2, %v9183_v32, 0.0 }
 0xa0f   : > { %5689 = vadd.xlane.f32.xlu0 %v5688_v60 }
 0xa10   : > { %v9189_v35 = vpop.eup %7672 }
 0xa11   : > { %v5694_v34 = vsel %vm982_vm2, %v9189_v35, 0.0 }
 0xa13   : > { %5695 = vadd.xlane.f32.xlu0 %v5694_v34 }
 0xa1f   : > { %6245 = vrot.lane.b32.xlu1 %v8492_v18, %s7958_s13  ;;  %v9426_v18 = vld [vmem:[#allocation26_spill] sm:$0xff] }
 0xa23   : > { %3609 = vrot.lane.b32.xlu1 %v8917_v47, %s7959_s0  ;;  %v9428_v47 = vld [vmem:[#allocation27_spill] sm:$0xff] }
 0xa27   : > { %4970 = vrot.lane.b32.xlu1 %v9115_v33, %s7960_s19 }
 0xa29   : > { %6169 = vrot.lane.b32.xlu0 %v8494_v19, %s7958_s13  ;;  %v9427_v19 = vld [vmem:[#allocation28_spill] sm:$0xff] }
 0xa2b   : > { %3613 = vrot.lane.b32.xlu1 %v8921_v25, %s7959_s0  ;;  %v5866_v25 = vpop.permute.xlu1 %5865 }
 0xa2d   : > { %3607 = vrot.lane.b32.xlu0 %v8913_v54, %s7959_s0  ;;  %v9429_v54 = vld [vmem:[#allocation29_spill] sm:$0xff] }
 0xa2f   : > { %4974 = vrot.lane.b32.xlu1 %v9123_v59, %s7960_s19 }
 0xa31   : > { %4968 = vrot.lane.b32.xlu0 %v9117_v41, %s7960_s19 }
 0xa33   : > { %3617 = vrot.lane.b32.xlu1 %v8923_v50, %s7959_s0  ;;  %v5942_v50 = vpop.permute.xlu1 %5941 }
 0xa35   : > { %3611 = vrot.lane.b32.xlu0 %v9426_v18, %s7959_s0 }
 0xa37   : > { %4978 = vrot.lane.b32.xlu1 %v9125_v10, %s7960_s19  ;;  %v6094_v33 = vpop.permute.xlu1 %6093 }
 0xa39   : > { %4972 = vrot.lane.b32.xlu0 %v9119_v43, %s7960_s19  ;;  %v6018_v43 = vpop.permute.xlu0 %6017 }
 0xa3b   : > { %3621 = vrot.lane.b32.xlu1 %v9427_v19, %s7959_s0 }
 0xa3d   : > { %3615 = vrot.lane.b32.xlu0 %v9428_v47, %s7959_s0 }
 0xa3f   : > { %4982 = vrot.lane.b32.xlu1 %v9129_v61, %s7960_s19 }
 0xa41   : > { %4976 = vrot.lane.b32.xlu0 %v9121_v4, %s7960_s19 }
 0xa45   : > { %3619 = vrot.lane.b32.xlu0 %v9429_v54, %s7959_s0 }
 0xa49   : > { %4980 = vrot.lane.b32.xlu0 %v9127_v7, %s7960_s19 }
 0xa8e   : > { %v5675_v41 = vpop.xlane.xlu1 %5674 }
 0xa8f   : > { %7674 = vrcp.f32 %v5675_v41 }
 0xa92   : > { %v5681_v59 = vpop.xlane.xlu1 %5680 }
 0xa93   : > { %7676 = vrcp.f32 %v5681_v59  ;;  %v5678_v10 = vpop.xlane.xlu0 %5677 }
 0xa94   : > { %7678 = vrcp.f32 %v5678_v10 }
 0xa97   : > { %v5687_v42 = vpop.xlane.xlu1 %5686 }
 0xa98   : > { %7680 = vrcp.f32 %v5687_v42  ;;  %v5684_v61 = vpop.xlane.xlu0 %5683 }
 0xa99   : > { %v7675_v39 = vpop.eup %7674  ;;  %7682 = vrcp.f32 %v5684_v61 }
 0xa9a   : > { %v5705_v4 = vmul.f32 %v7675_v39, %v9159_v58 }
 0xa9b   : > { %v5693_v48 = vpop.xlane.xlu1 %5692 }
 0xa9c   : > { %7684 = vrcp.f32 %v5693_v48  ;;  %v5690_v7 = vpop.xlane.xlu0 %5689  ;;  %7367 = vmatmul.mubr.msk.f32.vlgmr.msra.gmra.mrb[64].mxu0 %vm982_vm2, %v5705_v4 }
 0xa9d   : > { %v7677_v51 = vpop.eup %7676  ;;  %7686 = vrcp.f32 %v5690_v7  ;;  %7375 = vmatpush3.msra.mxu0 %v5866_v25  ;;  %7376 = vmatprep.mubr.msk.f32.mxu0 %vm7953_vm1, %v9425_v3 }
 0xa9e   : > { %v7679_v55 = vpop.eup %7678  ;;  %v5707_v20 = vmul.f32 %v7677_v51, %v9163_v53  ;;  %7384 = vmatprep.subr.mxu0 %v9425_v3 }
 0xa9f   : > { %v5706_v30 = vmul.f32 %v7679_v55, %v9166_v28  ;;  %v6246_v52 = vpop.permute.xlu1 %6245 }
 0xaa0   : > { %v5696_v23 = vpop.xlane.xlu0 %5695  ;;  %7377 = vmatmul.mubr.msk.f32.vlgmr.msra.gmra.mrb[66].mxu0 %vm982_vm2, %v5707_v20 }
 0xaa1   : > { %7688 = vrcp.f32 %v5696_v23  ;;  %7372 = vmatmul.mubr.msk.f32.vlgmr.msra.gmra.mrb[72].mxu1 %vm982_vm2, %v5706_v30  ;;  %7385 = vmatpush3.msra.mxu0 %v6018_v43 }
 0xaa2   : > { %v7681_v31 = vpop.eup %7680  ;;  %7380 = vmatpush3.msra.mxu1 %v5942_v50  ;;  %7381 = vmatprep.mubr.msk.f32.mxu1 %vm7953_vm1, %v9425_v3 }
 0xaa3   : > { %v7683_v24 = vpop.eup %7682  ;;  %v5709_v13 = vmul.f32 %v7681_v31, %v9173_v1  ;;  %v3610_v27 = vpop.permute.xlu1 %3609  ;;  %7386 = vmatprep.mubr.msk.f32.mxu0 %vm7953_vm1, %v9425_v3  ;;  %7389 = vmatprep.subr.mxu1 %v9425_v3  ;;  %v6373_v1 = vld [vmem:[#allocation12 + $0x18] sm:$0xff] }
 0xaa4   : > { %v5708_v15 = vmul.f32 %v7683_v24, %v9175_v56  ;;  %3633 = vst.msk [vmem:[#allocation2 + $0x8] sm:$0xff] %vm3631_vm11, %v3610_v27  ;;  %v6170_v9 = vpop.permute.xlu0 %6169  ;;  %7394 = vmatprep.subr.mxu0 %v9425_v3  ;;  %v7452_v56 = vpack.c.bf16 %v6373_v1, %v6372_v57 }
 0xaa5   : > { %7387 = vmatmul.mubr.msk.f32.vlgmr.msra.gmra.mrb[68].mxu0 %vm982_vm2, %v5709_v13 }
 0xaa6   : > { %v7685_v2 = vpop.eup %7684  ;;  %7382 = vmatmul.mubr.msk.f32.vlgmr.msra.gmra.mrb[74].mxu1 %vm982_vm2, %v5708_v15  ;;  %7395 = vmatpush3.msra.mxu0 %v6170_v9 }
 0xaa7   : > { %v7687_v14 = vpop.eup %7686  ;;  %v5711_v6 = vmul.f32 %v7685_v2, %v9181_v29  ;;  %7390 = vmatpush3.msra.mxu1 %v6094_v33  ;;  %v4971_v12 = vpop.permute.xlu1 %4970  ;;  %7391 = vmatprep.mubr.msk.f32.mxu1 %vm7953_vm1, %v9425_v3 }
 0xaa8   : > { %v5710_v5 = vmul.f32 %v7687_v14, %v9183_v32  ;;  %4994 = vst.msk [vmem:[#allocation2 + $0x8] sm:$0xff] %vm4992_vm12, %v4971_v12  ;;  %v3608_v16 = vpop.permute.xlu0 %3607  ;;  %7396 = vmatprep.mubr.msk.f32.mxu0 %vm7953_vm1, %v9425_v3  ;;  %7399 = vmatprep.subr.mxu1 %v9425_v3 }
 0xaa9   : > { %3632 = vst.msk [vmem:[#allocation2] sm:$0xff] %vm3631_vm11, %v3608_v16  ;;  %7397 = vmatmul.mubr.msk.f32.vlgmr.msra.gmra.mrb[70].mxu0 %vm982_vm2, %v5711_v6  ;;  %7449 = vmatprep.subr.bf16.mxu0 %v7448_v26 }
 0xaaa   : > { %7392 = vmatmul.mubr.msk.f32.vlgmr.msra.gmra.mrb[76].mxu1 %vm982_vm2, %v5710_v5  ;;  %7451 = vmatpush3.bf16.msra.mxu0 %v7448_v26 }
 0xaab   : > { %v7689_v11 = vpop.eup %7688  ;;  %7400 = vmatpush3.msra.mxu1 %v6246_v52  ;;  %v3614_v8 = vpop.permute.xlu1 %3613  ;;  %7401 = vmatprep.mubr.msk.f32.mxu1 %vm7953_vm1, %v9425_v3 }
 0xaac   : > { %v5712_v17 = vmul.f32 %v7689_v11, %v9189_v35  ;;  %3635 = vst.msk [vmem:[#allocation2 + $0x18] sm:$0xff] %vm3631_vm11, %v3614_v8  ;;  %v4969_v63 = vpop.permute.xlu0 %4968  ;;  %7453 = vmatprep.subr.bf16.mxu0 %v7452_v56 }
 0xaad   : > { %4993 = vst.msk [vmem:[#allocation2] sm:$0xff] %vm4992_vm12, %v4969_v63 }
 0xaae   : > { %7402 = vmatmul.mubr.msk.f32.vlgmr.msra.gmra.mrb[78].mxu1 %vm982_vm2, %v5712_v17  ;;  %7455 = vmatpush3.bf16.msra.mxu0 %v7452_v56 }
 0xaaf   : > { %v4975_v40 = vpop.permute.xlu1 %4974 }
 0xab0   : > { %4996 = vst.msk [vmem:[#allocation2 + $0x18] sm:$0xff] %vm4992_vm12, %v4975_v40  ;;  %v3612_v58 = vpop.permute.xlu0 %3611 }
 0xab1   : > { %3634 = vst.msk [vmem:[#allocation2 + $0x10] sm:$0xff] %vm3631_vm11, %v3612_v58 }
 0xab3   : > { %v3618_v49 = vpop.permute.xlu1 %3617 }
 0xab4   : > { %3637 = vst.msk [vmem:[#allocation2 + $0x28] sm:$0xff] %vm3631_vm11, %v3618_v49  ;;  %v4973_v0 = vpop.permute.xlu0 %4972 }
 0xab5   : > { %4995 = vst.msk [vmem:[#allocation2 + $0x10] sm:$0xff] %vm4992_vm12, %v4973_v0 }
 0xab7   : > { %v4979_v3 = vpop.permute.xlu1 %4978 }
 0xab8   : > { %4998 = vst.msk [vmem:[#allocation2 + $0x28] sm:$0xff] %vm4992_vm12, %v4979_v3  ;;  %v3616_v45 = vpop.permute.xlu0 %3615 }
 0xab9   : > { %3636 = vst.msk [vmem:[#allocation2 + $0x20] sm:$0xff] %vm3631_vm11, %v3616_v45 }
 0xabb   : > { %v3622_v22 = vpop.permute.xlu1 %3621 }
 0xabc   : > { %3639 = vst.msk [vmem:[#allocation2 + $0x38] sm:$0xff] %vm3631_vm11, %v3622_v22  ;;  %v4977_v44 = vpop.permute.xlu0 %4976 }
 0xabd   : > { %4997 = vst.msk [vmem:[#allocation2 + $0x20] sm:$0xff] %vm4992_vm12, %v4977_v44 }
 0xabf   : > { %v4983_v62 = vpop.permute.xlu1 %4982 }
 0xac0   : > { %5000 = vst.msk [vmem:[#allocation2 + $0x38] sm:$0xff] %vm4992_vm12, %v4983_v62  ;;  %v3620_v53 = vpop.permute.xlu0 %3619 }
 0xac1   : > { %3638 = vst.msk [vmem:[#allocation2 + $0x30] sm:$0xff] %vm3631_vm11, %v3620_v53 }
 0xac4   : > { %v4981_v28 = vpop.permute.xlu0 %4980 }
 0xac5   : > { %4999 = vst.msk [vmem:[#allocation2 + $0x30] sm:$0xff] %vm4992_vm12, %v4981_v28 }
 0xb6f   : > { %v5785_v38 = vpop.f32.mrb[64].mxu0 }
 0xb70   : > { %v7368_v37 = vpop.f32.mrb[65].mxu0  ;;  %6329 = vrot.lane.b32.xlu0 %v5785_v38, %s7961_s15 }
 0xb73   : > { %v5937_v29 = vpop.f32.mrb[66].mxu0 }
 0xb74   : > { %v5861_v32 = vpop.f32.mrb[72].mxu1  ;;  %v7378_v36 = vpop.f32.mrb[67].mxu0  ;;  %6333 = vrot.lane.b32.xlu0 %v5937_v29, %s7961_s15 }
 0xb75   : > { %6331 = vrot.lane.b32.xlu1 %v5861_v32, %s7961_s15  ;;  %v7373_v60 = vpop.f32.mrb[73].mxu1 }
 0xb78   : > { %v6089_v35 = vpop.f32.mrb[68].mxu0 }
 0xb79   : > { %v6013_v34 = vpop.f32.mrb[74].mxu1  ;;  %6337 = vrot.lane.b32.xlu0 %v6089_v35, %s7961_s15  ;;  %v7388_v18 = vpop.f32.mrb[69].mxu0 }
 0xb7a   : > { %6335 = vrot.lane.b32.xlu1 %v6013_v34, %s7961_s15  ;;  %v7383_v19 = vpop.f32.mrb[75].mxu1 }
 0xb7c   : > { %v6241_v47 = vpop.f32.mrb[70].mxu0 }
 0xb7d   : > { %v6165_v54 = vpop.f32.mrb[76].mxu1  ;;  %6341 = vrot.lane.b32.xlu0 %v6241_v47, %s7961_s15  ;;  %v7398_v25 = vpop.f32.mrb[71].mxu0 }
 0xb7e   : > { %6339 = vrot.lane.b32.xlu1 %v6165_v54, %s7961_s15  ;;  %v7393_v50 = vpop.f32.mrb[77].mxu1 }
 0xb81   : > { %v6317_v33 = vpop.f32.mrb[78].mxu1 }
 0xb82   : > { %6343 = vrot.lane.b32.xlu1 %v6317_v33, %s7961_s15  ;;  %v7403_v41 = vpop.f32.mrb[79].mxu1 }
 0xbe2   : > { %v6330_v43 = vpop.permute.xlu0 %6329 }
 0xbe3   : > { %6354 = vst.msk [vmem:[#allocation2] sm:$0xff] %vm6353_vm13, %v6330_v43 }
 0xbe6   : > { %v6334_v59 = vpop.permute.xlu0 %6333 }
 0xbe7   : > { %6356 = vst.msk [vmem:[#allocation2 + $0x10] sm:$0xff] %vm6353_vm13, %v6334_v59  ;;  %v6332_v10 = vpop.permute.xlu1 %6331 }
 0xbe8   : > { %6355 = vst.msk [vmem:[#allocation2 + $0x8] sm:$0xff] %vm6353_vm13, %v6332_v10 }
 0xbea   : > { %v6362_v42 = vld [vmem:[#allocation2] sm:$0xff] }
 0xbeb   : > { %v6338_v61 = vpop.permute.xlu0 %6337  ;;  %7412 = vmatprep.mubr.msk.f32.mxu0 %vm496_vm0, %v6362_v42 }
 0xbec   : > { %6358 = vst.msk [vmem:[#allocation2 + $0x20] sm:$0xff] %vm6353_vm13, %v6338_v61  ;;  %v6336_v39 = vpop.permute.xlu1 %6335 }
 0xbed   : > { %6357 = vst.msk [vmem:[#allocation2 + $0x18] sm:$0xff] %vm6353_vm13, %v6336_v39 }
 0xbee   : > { %v6364_v4 = vld [vmem:[#allocation2 + $0x10] sm:$0xff] }
 0xbef   : > { %v6342_v48 = vpop.permute.xlu0 %6341  ;;  %v6363_v7 = vld [vmem:[#allocation2 + $0x8] sm:$0xff] }
 0xbf0   : > { %6360 = vst.msk [vmem:[#allocation2 + $0x30] sm:$0xff] %vm6353_vm13, %v6342_v48  ;;  %v6340_v51 = vpop.permute.xlu1 %6339  ;;  %7413 = vmatmul.mubr.msk.f32.vlgmr.msra.gmra.mrb[72].mxu0 %vm496_vm0, %v6363_v7 }
 0xbf1   : > { %6359 = vst.msk [vmem:[#allocation2 + $0x28] sm:$0xff] %vm6353_vm13, %v6340_v51  ;;  %7415 = vmatprep.mubr.msk.f32.mxu0 %vm496_vm0, %v6364_v4 }
 0xbf3   : > { %v6366_v55 = vld [vmem:[#allocation2 + $0x20] sm:$0xff] }
 0xbf4   : > { %v6344_v20 = vpop.permute.xlu1 %6343  ;;  %v6365_v30 = vld [vmem:[#allocation2 + $0x18] sm:$0xff] }
 0xbf5   : > { %6361 = vst.msk [vmem:[#allocation2 + $0x38] sm:$0xff] %vm6353_vm13, %v6344_v20  ;;  %7416 = vmatmul.mubr.msk.f32.gmra.mrb[74].mxu0 %vm496_vm0, %v6365_v30 }
 0xbf6   : > { %7418 = vmatprep.mubr.msk.f32.mxu0 %vm496_vm0, %v6366_v55 }
 0xbf7   : > { %v6368_v52 = vld [vmem:[#allocation2 + $0x30] sm:$0xff] }
 0xbf8   : > { %v6367_v23 = vld [vmem:[#allocation2 + $0x28] sm:$0xff] }
 0xbf9   : > { %7419 = vmatmul.mubr.msk.f32.gmra.mrb[76].mxu0 %vm496_vm0, %v6367_v23 }
 0xbfa   : > { %7421 = vmatprep.mubr.msk.f32.mxu0 %vm496_vm0, %v6368_v52 }
 0xbfc   : > { %v6369_v31 = vld [vmem:[#allocation2 + $0x38] sm:$0xff] }
 0xbfd   : > { %7422 = vmatmul.mubr.msk.f32.gmra.mrb[78].mxu0 %vm496_vm0, %v6369_v31 }
 0xcc3   : > { %v7414_v24 = vpop.f32.mrb[72].mxu0 }
 0xcc4   : > { %6504 = vst.msk [vmem:[%s458_s14 + $0x8] sm:$0xff] %vm496_vm0, %v7414_v24  ;;  %v6464_v13 = vpop.f32.mrb[73].mxu0 }
 0xcc5   : > { %6503 = vst.msk [vmem:[%s458_s14] sm:$0xff] %vm496_vm0, %v6464_v13 }
 0xcc8   : > { %v7417_v27 = vpop.f32.mrb[74].mxu0 }
 0xcc9   : > { %6506 = vst.msk [vmem:[%s458_s14 + $0x18] sm:$0xff] %vm496_vm0, %v7417_v27  ;;  %v6474_v15 = vpop.f32.mrb[75].mxu0 }
 0xcca   : > { %6505 = vst.msk [vmem:[%s458_s14 + $0x10] sm:$0xff] %vm496_vm0, %v6474_v15 }
 0xccc   : > { %v7420_v9 = vpop.f32.mrb[76].mxu0 }
 0xccd   : > { %6508 = vst.msk [vmem:[%s458_s14 + $0x28] sm:$0xff] %vm496_vm0, %v7420_v9  ;;  %v6484_v2 = vpop.f32.mrb[77].mxu0 }
 0xcce   : > { %6507 = vst.msk [vmem:[%s458_s14 + $0x20] sm:$0xff] %vm496_vm0, %v6484_v2 }
 0xcd0   : > { %v7423_v14 = vpop.f32.mrb[78].mxu0 }
 0xcd1   : > { %6510 = vst.msk [vmem:[%s458_s14 + $0x38] sm:$0xff] %vm496_vm0, %v7423_v14  ;;  %v6494_v6 = vpop.f32.mrb[79].mxu0 }
 0xcd2   : > { %6509 = vst.msk [vmem:[%s458_s14 + $0x30] sm:$0xff] %vm496_vm0, %v6494_v6 }
 0xcd3   : > { %7877 = shalt.err (!%p7874_p8)
}
 0xcd4   : > { %s7878_s27 = scalar_lea.hbm %s9298_s11, 1024  ;;  %s7882_s4 = scalar_lea.hbm %s9431_s23, 2048 }
 0xcd5   : > { %p7879_p1 = scmp.ne.s32.totalorder %s9298_s11, %s7878_s27  ;;  %p7883_p13 = scmp.lt.u32.totalorder %s9298_s11, %s9431_s23 }
 0xcd6   : > { %p7884_p3 = scmp.lt.u32.totalorder %s7882_s4, %s7878_s27  ;;  %p7886_p12 = scmp.lt.u32.totalorder %s7878_s27, %s9298_s11 }
 0xcd7   : > { %p7880_p0 = pnand %p7879_p1, %p9432_p2 }
 0xcd8   : > { %p7885_p7 = por %p7884_p3, %p7883_p13 }
 0xcd9   : > { %p7881_p11 = pneg %p7880_p0 }
 0xcda   : > { %p7887_p6 = por %p7886_p12, %p7885_p7 }
 0xcdc   : > { %p7888_p9 = pnand %p7887_p6, %p7881_p11 }
 0xcde   : > { %7891 = shalt.err (!%p7888_p9)
}
 0xcdf   : > { %s7963_s13 = smov 128  }
 0xce0   : > { %7478 = dma.vmem_to_hbm [thread:$0]  (%p9432_p2), %s9293_s16, 1024, %s9298_s11, %s6512_s18, %s7963_s13, %s7963_s13, %s7959_s0  }
 0xce1 PF: > { %s9433_s19 = sld [smem:[#allocation20_spill]]  ;;  %s9434_s15 = sld [smem:[#allocation25_spill]] }
 0xce2   : > { %s9435_s14 = sld [smem:[#allocation21_spill]] }
 0xce7   : > { %s6540_s21 = sand.u32 1, %s9433_s19   ;;  %p9436_p10 = scmp.ne.s32.totalorder %s9434_s15, 0 }
 0xce8   : > { %p9437_p4 = scmp.ge.s32.totalorder %s9435_s14, 2  ;;  %s6541_s12 = scalar_lea.sflag [#allocation5], %s6540_s21 }
 0xcea   : > { %p7501_p5 = pnand %p9437_p4, %p9436_p10 }
 0xcec   : > { %7925 = dma.done.wait (!%p7501_p5), %s6541_s12, 1024  }
 0xced   : > { %7927 = vsyncadd (!%p7501_p5), %s6541_s12, 4294966272  ;;  %s9438_s30 = sld [smem:[#allocation22_spill]]  ;;  %s9439_s10 = sld [smem:[#allocation23_spill]] }
 0xcee   : > { %s9440_s27 = smov %s7934_s28  ;;  %s9441_s28 = smov %s7938_s29 }
 0xcf3   : > { %p26_p8 = scmp.ge.s32.totalorder %s9438_s30, 4   ;;  %s9442_s29 = smov %s9439_s10 }
 0xcf5   :  { %28 = sbr.rel (!%p26_p8) target bundleno = 15 (0xf), region = 136 }
 0xcfc   :  { %6546 = vsyncpa [#allocation4], 1 }
 0xcfd   :  { %6548 = vsyncpa [#allocation4 + $0x1], 1 }
 0xcfe   :  { %6549 = vsyncpa [#allocation7], 1 }
 0xcff   :  { %6551 = vsyncpa [#allocation7 + $0x1], 1 }
 0xd00   :  { %6552 = vsyncpa [#allocation10], 1 }
 0xd01   :  { %6553 = vsyncpa [#allocation13], 1 }
 0xd02   :  { %6554 = vsyncpa [#allocation5], 1 }
 0xd03   :  { %6556 = vsyncpa [#allocation5 + $0x1], 1 }

</bundles_post_ra>
